<compile_context>
chip_gen: v7x
topology: tpu7x:2x2x1
jax: 0.10.0
libtpu: 0.0.40
codegen_flags: <defaults>
</compile_context>

<pallas_src>
from functools import partial

import jax
import jax.numpy as jnp
from jax import lax
from jax.experimental import pallas as pl
from jax.experimental.pallas import tpu as pltpu

# Model widths (RAFT-small-ish stand-in; the reference RAFT source was not provided).
HDIM, CDIM, FDIM, MDIM = 24, 24, 32, 32

# Rows of the im2col matrix processed per grid step.
TILE_M = 1024
_VMEM_LIMIT = 32 * 1024 * 1024


def _round_up(x, m):
    return -(-x // m) * m


def _choose_tile_m(M):
    """>=2 grid steps whenever possible (v7x dual-TensorCore sharding), tiles a
    multiple of 16 rows (bf16 sublane packing), capped at TILE_M."""
    if M <= 16:
        return M                                   # single full-extent block
    return min(TILE_M, _round_up((M + 1) // 2, 16))


# ---------------------------------------------------------------------------
# Pallas kernels
# ---------------------------------------------------------------------------
def _apply_act(acc, act):
    if act == "relu":
        return jnp.maximum(acc, 0.0)
    if act == "sigmoid":
        return jax.nn.sigmoid(acc)
    if act == "tanh":
        return jnp.tanh(acc)
    return acc


def _build_mm_kernel(n_x, has_pre, act, mode):
    """Split-K matmul with fused epilogue.

    refs layout: [x_0, w_0, ..., x_{n-1}, w_{n-1}, bias, (pre),
                  (z, h | w2, b2, residual), out]
      * split-K accumulation: acc = sum_i dot(x_i, w_i)   (bf16 in, f32 acc)
      * bias (+ loop-invariant pre-add) in f32
      * mode "plain": out = act(acc)
      * mode "gru"  : out = (1 - z) * h + z * tanh(acc)        (ConvGRU update)
      * mode "head2": out = residual + relu(acc) @ w2 + b2     (fused flow head)
    """

    def kernel(*refs):
        i = 0
        acc = None
        for _ in range(n_x):
            x_ref, w_ref = refs[i], refs[i + 1]
            i += 2
            d = jnp.dot(x_ref[...], w_ref[...], preferred_element_type=jnp.float32)
            acc = d if acc is None else acc + d
        acc = acc + refs[i][...]                       # bias (1, N), f32
        i += 1
        if has_pre:
            acc = acc + refs[i][...].astype(jnp.float32)
            i += 1
        if mode == "gru":
            z = refs[i][...].astype(jnp.float32)
            h = refs[i + 1][...].astype(jnp.float32)
            i += 2
            out = (1.0 - z) * h + z * jnp.tanh(acc)
        elif mode == "head2":
            w2_ref, b2_ref, r_ref = refs[i], refs[i + 1], refs[i + 2]
            i += 3
            y = _apply_act(acc, act).astype(jnp.bfloat16)   # h1 result stays in VMEM
            out = (r_ref[...].astype(jnp.float32) + b2_ref[...]
                   + jnp.dot(y, w2_ref[...], preferred_element_type=jnp.float32))
        else:
            out = _apply_act(acc, act)
        refs[i][...] = out.astype(refs[i].dtype)

    return kernel


def _corr_kernel(a_ref, b_ref, o_ref, *, scale):
    """All-pairs correlation tile: (A @ B^T) * scale, B^T never materialized."""
    o_ref[...] = (scale * lax.dot_general(
        a_ref[...], b_ref[...], (((1,), (1,)), ((), ())),
        preferred_element_type=jnp.float32)).astype(o_ref.dtype)


# ---------------------------------------------------------------------------
# Fused, M-tiled split-K matmul wrapper
# ---------------------------------------------------------------------------
def fused_matmul(xs_ws, b, *, act="none", pre=None, gru=None, head2=None,
                 residual=None, out_dtype=jnp.float32):
    """sum_i x_i:[M,K_i] @ w_i:[K_i,N]  + b, with a fused epilogue, tiled over M.

    * MXU inputs bf16, accumulation / epilogue math f32 (v5e-safe).
    * K_i and N ride as full-extent blocks; only M is padded, and only when it
      is not already a multiple of the chosen M tile.
    * pre  : [M,N]   loop-invariant contribution added before the activation.
    * gru  : (z, h)  -> out = (1 - z) * h + z * tanh(acc)
    * head2: (w2, b2) with residual -> out = residual + relu(acc) @ w2 + b2
    """
    M = xs_ws[0][0].shape[0]
    N = xs_ws[0][1].shape[1]
    n_out = head2[0].shape[1] if head2 is not None else N
    assert head2 is None or residual is not None

    tile_m = _choose_tile_m(M)
    Mp = _round_up(M, tile_m)
    pad_m = Mp - M

    def _padm(a):
        return jnp.pad(a, ((0, pad_m), (0, 0))) if pad_m else a

    inputs, specs = [], []
    row = lambda i: (i, 0)
    fixed = lambda i: (0, 0)

    def add(arr, block, imap):
        inputs.append(arr)
        specs.append(pl.BlockSpec(block, imap))

    for x, w in xs_ws:
        add(_padm(x.astype(jnp.bfloat16)), (tile_m, x.shape[1]), row)
        add(w, (w.shape[0], N), fixed)                       # resident across grid
    add(b.reshape(1, N).astype(jnp.float32), (1, N), fixed)
    if pre is not None:
        add(_padm(pre), (tile_m, N), row)
    mode = "plain"
    if gru is not None:
        mode = "gru"
        z, h = gru
        add(_padm(z), (tile_m, N), row)
        add(_padm(h), (tile_m, N), row)
    elif head2 is not None:
        mode = "head2"
        w2, b2 = head2
        add(w2, (N, n_out), fixed)
        add(b2.reshape(1, n_out).astype(jnp.float32), (1, n_out), fixed)
        add(_padm(residual), (tile_m, n_out), row)

    kernel = _build_mm_kernel(len(xs_ws), pre is not None, act, mode)
    out = pl.pallas_call(
        kernel,
        out_shape=jax.ShapeDtypeStruct((Mp, n_out), out_dtype),
        grid=(Mp // tile_m,),
        in_specs=specs,
        out_specs=pl.BlockSpec((tile_m, n_out), row),
        compiler_params=pltpu.CompilerParams(
            dimension_semantics=("parallel",),
            vmem_limit_bytes=_VMEM_LIMIT),
    )(*inputs)
    return out[:M] if pad_m else out


# ---------------------------------------------------------------------------
# im2col (JAX glue) — produces bf16 columns directly
# ---------------------------------------------------------------------------
def _im2col3(x, stride=1):
    """3x3 SAME im2col, NHWC -> (B*Ho*Wo, 9*Cin) bf16.
    TODO(synk): move into the kernel (shifted in-VMEM dots) to drop the 9x
    HBM blow-up; the dominant (9*npix-channel corr) case is already hoisted."""
    B, H, W, C = x.shape
    Ho, Wo = -(-H // stride), -(-W // stride)
    xp = jnp.pad(x.astype(jnp.bfloat16), ((0, 0), (1, 1), (1, 1), (0, 0)))
    patches = [xp[:, dy:dy + (Ho - 1) * stride + 1:stride,
                  dx:dx + (Wo - 1) * stride + 1:stride, :]
               for dy in range(3) for dx in range(3)]
    return jnp.concatenate(patches, axis=-1).reshape(B * Ho * Wo, 9 * C)


# ---------------------------------------------------------------------------
# Batched all-pairs correlation (tiled over batch x query rows, bf16 out)
# ---------------------------------------------------------------------------
def batched_correlation(f1, f2):
    B, npix, fdim = f1.shape
    scale = float(fdim) ** -0.5
    tile_q = npix
    for cand in (256, 128, 64, 32, 16):               # 16-row multiples (bf16)
        if npix > cand and npix % cand == 0:
            tile_q = cand
            break
    return pl.pallas_call(
        partial(_corr_kernel, scale=scale),
        out_shape=jax.ShapeDtypeStruct((B, npix, npix), jnp.bfloat16),
        grid=(B, npix // tile_q),
        in_specs=[pl.BlockSpec((None, tile_q, fdim), lambda b, q: (b, q, 0)),
                  pl.BlockSpec((None, npix, fdim), lambda b, q: (b, 0, 0))],
        out_specs=pl.BlockSpec((None, tile_q, npix), lambda b, q: (b, q, 0)),
        compiler_params=pltpu.CompilerParams(
            dimension_semantics=("parallel", "parallel"),
            vmem_limit_bytes=_VMEM_LIMIT),
    )(f1.astype(jnp.bfloat16), f2.astype(jnp.bfloat16))


# ---------------------------------------------------------------------------
# Parameters: kaiming_normal_ fan_out / relu, zero bias (EVFlowNet._initialize_weights)
# ---------------------------------------------------------------------------
def _kaiming(key, k, cin, cout):
    std = (2.0 / (cout * k * k)) ** 0.5
    return jax.random.normal(key, (k, k, cin, cout), jnp.float32) * std


def init_params(key, in_ch=4, npix=16):
    ks = jax.random.split(key, 10)
    raw = {}

    def add(name, kk, cin, cout, i):
        raw[name + "_w"] = _kaiming(ks[i], kk, cin, cout)
        raw[name + "_b"] = jnp.zeros((cout,), jnp.float32)

    add("f1", 3, in_ch // 2, 16, 0)             # feature encoder (shared halves)
    add("f2", 3, 16, FDIM, 1)
    add("c1", 3, in_ch, 16, 2)                  # context encoder
    add("c2", 3, 16, HDIM + CDIM, 3)
    add("me", 3, npix + 2, MDIM, 4)             # motion encoder (corr + flow)
    add("gz", 3, HDIM + MDIM + CDIM, HDIM, 5)   # ConvGRU gates
    add("gr", 3, HDIM + MDIM + CDIM, HDIM, 6)
    add("gq", 3, HDIM + MDIM + CDIM, HDIM, 7)
    add("h1", 3, HDIM, 32, 8)                   # flow head (3x3 -> relu -> 1x1)
    add("h2", 1, 32, 2, 9)
    return raw


def _w2d(w):
    k, _, cin, cout = w.shape
    return w.reshape(k * k * cin, cout).astype(jnp.bfloat16)


def _wslice(w, a, b):
    return _w2d(w[:, :, a:b, :])


def prepare_params(raw, npix):
    """One-time prep: bf16 2-D weights, column-group splits for the hoists."""
    p = {}
    for n in ("f1", "f2", "c1", "c2", "h1", "h2"):
        p[n + "_w"], p[n + "_b"] = _w2d(raw[n + "_w"]), raw[n + "_b"]
    # motion encoder split: corr columns (loop-invariant) vs flow columns
    p["me_corr_w"] = _wslice(raw["me_w"], 0, npix)
    p["me_flow_w"] = _wslice(raw["me_w"], npix, npix + 2)
    p["me_b"] = raw["me_b"]
    # fused z+r gate conv, split by input-channel group: net / mot / ctx
    gzr = jnp.concatenate([raw["gz_w"], raw["gr_w"]], axis=-1)
    p["gzr_net_w"] = _wslice(gzr, 0, HDIM)
    p["gzr_mot_w"] = _wslice(gzr, HDIM, HDIM + MDIM)
    p["gzr_b"] = jnp.concatenate([raw["gz_b"], raw["gr_b"]])
    p["gq_net_w"] = _wslice(raw["gq_w"], 0, HDIM)
    p["gq_mot_w"] = _wslice(raw["gq_w"], HDIM, HDIM + MDIM)
    p["gq_b"] = raw["gq_b"]
    # constant ctx column groups of gzr and gq, fused into ONE precompute conv
    p["ctx_w"] = jnp.concatenate(
        [_wslice(gzr, HDIM + MDIM, HDIM + MDIM + CDIM),
         _wslice(raw["gq_w"], HDIM + MDIM, HDIM + MDIM + CDIM)], axis=-1)
    return p


# ---------------------------------------------------------------------------
# Forward pass: EVFlowNet.forward(event_volume) -> raft(event_volume)[-1]
# ---------------------------------------------------------------------------
def evflownet_forward(params, event_volume, iters=3):
    x = jnp.transpose(event_volume, (0, 2, 3, 1)).astype(jnp.float32)  # NCHW->NHWC
    B, H, W, C = x.shape
    x1, x2 = x[..., : C // 2], x[..., C // 2:]

    # feature encoder: both event halves batched through ONE conv pipeline
    xx = jnp.concatenate([x1, x2], axis=0)                       # [2B, H, W, C/2]
    H2, W2 = H // 2, W // 2
    Hc, Wc = H2 // 2, W2 // 2
    f = fused_matmul([(_im2col3(xx, 2), params["f1_w"])], params["f1_b"],
                     act="relu", out_dtype=jnp.bfloat16).reshape(2 * B, H2, W2, 16)
    f = fused_matmul([(_im2col3(f, 2), params["f2_w"])], params["f2_b"],
                     act="relu", out_dtype=jnp.bfloat16).reshape(2 * B, Hc, Wc, FDIM)
    f1v, f2v = f[:B], f[B:]
    npix = Hc * Wc
    M = B * npix

    # context encoder
    c = fused_matmul([(_im2col3(x, 2), params["c1_w"])], params["c1_b"],
                     act="relu", out_dtype=jnp.bfloat16).reshape(B, H2, W2, 16)
    c = fused_matmul([(_im2col3(c, 2), params["c2_w"])], params["c2_b"],
                     out_dtype=jnp.float32).reshape(B, Hc, Wc, HDIM + CDIM)
    net = jnp.tanh(c[..., :HDIM])                 # GRU hidden state stays f32
    ctx = jnp.maximum(c[..., HDIM:], 0.0)

    # all-pairs correlation, one batched tiled Pallas call (scale fused in-kernel)
    # TODO(synk): RAFT uses a 4-level correlation pyramid + radius lookup.
    corr = batched_correlation(f1v.reshape(B, npix, FDIM),
                               f2v.reshape(B, npix, FDIM)).reshape(B, Hc, Wc, npix)

    # ----- loop-invariant precomputation (conv is linear in its input-channel
    #       column groups, so hoisting these contributions is exact) -----
    mot_corr_pre = fused_matmul([(_im2col3(corr), params["me_corr_w"])],
                                jnp.zeros((MDIM,), jnp.float32))       # (M, MDIM)
    ctx_pre = fused_matmul([(_im2col3(ctx), params["ctx_w"])],
                           jnp.zeros((3 * HDIM,), jnp.float32))        # (M, 72)
    zr_ctx_pre, q_ctx_pre = ctx_pre[:, :2 * HDIM], ctx_pre[:, 2 * HDIM:]

    # iterative refinement (ConvGRU) — 4 fused pallas_calls / iteration
    flow = jnp.zeros((B, Hc, Wc, 2), jnp.float32)
    net_cols = _im2col3(net)
    for _ in range(iters):
        # motion encoder: only the 2-channel flow columns per iteration
        mot = fused_matmul([(_im2col3(flow), params["me_flow_w"])], params["me_b"],
                           act="relu", pre=mot_corr_pre, out_dtype=jnp.bfloat16)
        mot_cols = _im2col3(mot.reshape(B, Hc, Wc, MDIM))
        # fused z+r gate conv: split-K over (net, mot), ctx contribution pre-added
        zr = fused_matmul([(net_cols, params["gzr_net_w"]),
                           (mot_cols, params["gzr_mot_w"])], params["gzr_b"],
                          act="sigmoid", pre=zr_ctx_pre)               # (M, 48) f32
        z, r = zr[:, :HDIM], zr[:, HDIM:]
        rnet = r.reshape(B, Hc, Wc, HDIM) * net
        # candidate conv + GRU combine fused: net = (1-z)*net + z*tanh(...)
        net = fused_matmul([(_im2col3(rnet), params["gq_net_w"]),
                            (mot_cols, params["gq_mot_w"])], params["gq_b"],
                           pre=q_ctx_pre, gru=(z, net.reshape(M, HDIM))
                           ).reshape(B, Hc, Wc, HDIM)
        net_cols = _im2col3(net)          # reused by next iteration's gate conv
        # fused flow head: relu(net*h1) kept in VMEM, *h2 + residual in epilogue
        flow = fused_matmul([(net_cols, params["h1_w"])], params["h1_b"],
                            act="relu", head2=(params["h2_w"], params["h2_b"]),
                            residual=flow.reshape(M, 2)).reshape(B, Hc, Wc, 2)

    # only preds[-1] is returned, so upsample ONLY the final flow
    # TODO(synk): RAFT uses a learned convex (mask) upsampler.
    flow_up = 4.0 * jnp.repeat(jnp.repeat(flow, 4, axis=1), 4, axis=2)
    return jnp.transpose(flow_up, (0, 3, 1, 2))                  # NCHW [B, 2, H, W]


# ---------------------------------------------------------------------------
if __name__ == "__main__":
    key = jax.random.PRNGKey(0)
    k_param, k_data = jax.random.split(key)
    H = W = 16
    npix = (H // 4) * (W // 4)
    raw_params = init_params(k_param, in_ch=4, npix=npix)
    params = prepare_params(raw_params, npix=npix)
    event_volume = jax.random.normal(k_data, (2, 4, H, W), jnp.float32)

    fwd = jax.jit(evflownet_forward, static_argnames=("iters",))
    flow = jax.block_until_ready(fwd(params, event_volume, iters=3))
    assert flow.shape == (2, 2, 16, 16) and flow.dtype == jnp.float32
    assert bool(jnp.all(jnp.isfinite(flow)))
    print("KERNEL_OK")
</pallas_src>

<mosaic_0001>
module attributes {stable_mosaic.version = 11 : i64} {
  func.func @kernel(%arg0: i32, %arg1: memref<64x36xbf16, #tpu.memory_space<vmem>>, %arg2: memref<36x16xbf16, #tpu.memory_space<vmem>>, %arg3: memref<1x16xf32, #tpu.memory_space<vmem>>, %arg4: memref<64x16xbf16, #tpu.memory_space<vmem>>) attributes {dimension_semantics = [#tpu.dimension_semantics<parallel>], iteration_bounds = array<i64: 2>, scalar_prefetch = 0 : i64, scratch_operands = 0 : i64, tpu.core_type = #tpu.core_type<tc>, window_params = [{transform_indices = @transform_0, window_bounds = array<i64: 64, 36>}, {pipeline_mode = #tpu.pipeline_mode<synchronous>, transform_indices = @transform_1, window_bounds = array<i64: 36, 16>}, {pipeline_mode = #tpu.pipeline_mode<synchronous>, transform_indices = @transform_2, window_bounds = array<i64: 1, 16>}, {transform_indices = @transform_3, window_bounds = array<i64: 64, 16>}]} {
    %c0 = arith.constant 0 : index
    %c0_0 = arith.constant 0 : index
    %0 = vector.load %arg1[%c0, %c0_0] : memref<64x36xbf16, #tpu.memory_space<vmem>>, vector<64x36xbf16>
    %c0_1 = arith.constant 0 : index
    %c0_2 = arith.constant 0 : index
    %1 = vector.load %arg2[%c0_1, %c0_2] : memref<36x16xbf16, #tpu.memory_space<vmem>>, vector<36x16xbf16>
    %cst = arith.constant dense<0.000000e+00> : vector<64x16xf32>
    %2 = tpu.matmul %0, %1, %cst {dimension_numbers = #tpu.dot_dimension_numbers<[1], [0], [0], [1], [0, 0, 1, 1], [], []>} : vector<64x36xbf16>, vector<36x16xbf16>, vector<64x16xf32> -> vector<64x16xf32>
    %c0_3 = arith.constant 0 : index
    %c0_4 = arith.constant 0 : index
    %3 = vector.load %arg3[%c0_3, %c0_4] : memref<1x16xf32, #tpu.memory_space<vmem>>, vector<1x16xf32>
    %4 = vector.broadcast %3 : vector<1x16xf32> to vector<64x16xf32>
    %5 = arith.addf %2, %4 : vector<64x16xf32>
    %cst_5 = arith.constant 0.000000e+00 : f32
    %6 = vector.broadcast %cst_5 : f32 to vector<64x16xf32>
    %7 = arith.maximumf %5, %6 : vector<64x16xf32>
    %8 = arith.truncf %7 : vector<64x16xf32> to vector<64x16xbf16>
    %c0_6 = arith.constant 0 : index
    %c0_7 = arith.constant 0 : index
    %9 = vector.load %arg4[%c0_6, %c0_7] : memref<64x16xbf16, #tpu.memory_space<vmem>>, vector<64x16xbf16>
    tpu.vector_store %arg4[%c0_6, %c0_7], %8 {strides = array<i32>} : memref<64x16xbf16, #tpu.memory_space<vmem>>, vector<64x16xbf16>,
    return
  }
  func.func @transform_0(%arg0: i32) -> (i32, i32) {
    %c0_i32 = arith.constant 0 : i32
    %c0_i32_0 = arith.constant 0 : i32
    return %arg0, %c0_i32 : i32, i32
  }
  func.func @transform_1(%arg0: i32) -> (i32, i32) {
    %c0_i32 = arith.constant 0 : i32
    %c0_i32_0 = arith.constant 0 : i32
    %c0_i32_1 = arith.constant 0 : i32
    return %c0_i32, %c0_i32_0 : i32, i32
  }
  func.func @transform_2(%arg0: i32) -> (i32, i32) {
    %c0_i32 = arith.constant 0 : i32
    %c0_i32_0 = arith.constant 0 : i32
    %c0_i32_1 = arith.constant 0 : i32
    return %c0_i32, %c0_i32_0 : i32, i32
  }
  func.func @transform_3(%arg0: i32) -> (i32, i32) {
    %c0_i32 = arith.constant 0 : i32
    %c0_i32_0 = arith.constant 0 : i32
    return %arg0, %c0_i32 : i32, i32
  }
}

module attributes {stable_mosaic.version = 11 : i64} {
  func.func @kernel(%arg0: i32, %arg1: memref<16x144xbf16, #tpu.memory_space<vmem>>, %arg2: memref<144x48xbf16, #tpu.memory_space<vmem>>, %arg3: memref<1x48xf32, #tpu.memory_space<vmem>>, %arg4: memref<16x48xf32, #tpu.memory_space<vmem>>) attributes {dimension_semantics = [#tpu.dimension_semantics<parallel>], iteration_bounds = array<i64: 2>, scalar_prefetch = 0 : i64, scratch_operands = 0 : i64, tpu.core_type = #tpu.core_type<tc>, window_params = [{transform_indices = @transform_0, window_bounds = array<i64: 16, 144>}, {pipeline_mode = #tpu.pipeline_mode<synchronous>, transform_indices = @transform_1, window_bounds = array<i64: 144, 48>}, {pipeline_mode = #tpu.pipeline_mode<synchronous>, transform_indices = @transform_2, window_bounds = array<i64: 1, 48>}, {transform_indices = @transform_3, window_bounds = array<i64: 16, 48>}]} {
    %c0 = arith.constant 0 : index
    %c0_0 = arith.constant 0 : index
    %0 = vector.load %arg1[%c0, %c0_0] : memref<16x144xbf16, #tpu.memory_space<vmem>>, vector<16x144xbf16>
    %c0_1 = arith.constant 0 : index
    %c0_2 = arith.constant 0 : index
    %1 = vector.load %arg2[%c0_1, %c0_2] : memref<144x48xbf16, #tpu.memory_space<vmem>>, vector<144x48xbf16>
    %cst = arith.constant dense<0.000000e+00> : vector<16x48xf32>
    %2 = tpu.matmul %0, %1, %cst {dimension_numbers = #tpu.dot_dimension_numbers<[1], [0], [0], [1], [0, 0, 1, 1], [], []>} : vector<16x144xbf16>, vector<144x48xbf16>, vector<16x48xf32> -> vector<16x48xf32>
    %c0_3 = arith.constant 0 : index
    %c0_4 = arith.constant 0 : index
    %3 = vector.load %arg3[%c0_3, %c0_4] : memref<1x48xf32, #tpu.memory_space<vmem>>, vector<1x48xf32>
    %4 = vector.broadcast %3 : vector<1x48xf32> to vector<16x48xf32>
    %5 = arith.addf %2, %4 : vector<16x48xf32>
    %c0_5 = arith.constant 0 : index
    %c0_6 = arith.constant 0 : index
    %6 = vector.load %arg4[%c0_5, %c0_6] : memref<16x48xf32, #tpu.memory_space<vmem>>, vector<16x48xf32>
    tpu.vector_store %arg4[%c0_5, %c0_6], %5 {strides = array<i32>} : memref<16x48xf32, #tpu.memory_space<vmem>>, vector<16x48xf32>,
    return
  }
  func.func @transform_0(%arg0: i32) -> (i32, i32) {
    %c0_i32 = arith.constant 0 : i32
    %c0_i32_0 = arith.constant 0 : i32
    return %arg0, %c0_i32 : i32, i32
  }
  func.func @transform_1(%arg0: i32) -> (i32, i32) {
    %c0_i32 = arith.constant 0 : i32
    %c0_i32_0 = arith.constant 0 : i32
    %c0_i32_1 = arith.constant 0 : i32
    return %c0_i32, %c0_i32_0 : i32, i32
  }
  func.func @transform_2(%arg0: i32) -> (i32, i32) {
    %c0_i32 = arith.constant 0 : i32
    %c0_i32_0 = arith.constant 0 : i32
    %c0_i32_1 = arith.constant 0 : i32
    return %c0_i32, %c0_i32_0 : i32, i32
  }
  func.func @transform_3(%arg0: i32) -> (i32, i32) {
    %c0_i32 = arith.constant 0 : i32
    %c0_i32_0 = arith.constant 0 : i32
    return %arg0, %c0_i32 : i32, i32
  }
}

module attributes {stable_mosaic.version = 11 : i64} {
  func.func @kernel(%arg0: i32, %arg1: memref<16x216xbf16, #tpu.memory_space<vmem>>, %arg2: memref<216x72xbf16, #tpu.memory_space<vmem>>, %arg3: memref<1x72xf32, #tpu.memory_space<vmem>>, %arg4: memref<16x72xf32, #tpu.memory_space<vmem>>) attributes {dimension_semantics = [#tpu.dimension_semantics<parallel>], iteration_bounds = array<i64: 2>, scalar_prefetch = 0 : i64, scratch_operands = 0 : i64, tpu.core_type = #tpu.core_type<tc>, window_params = [{transform_indices = @transform_0, window_bounds = array<i64: 16, 216>}, {pipeline_mode = #tpu.pipeline_mode<synchronous>, transform_indices = @transform_1, window_bounds = array<i64: 216, 72>}, {pipeline_mode = #tpu.pipeline_mode<synchronous>, transform_indices = @transform_2, window_bounds = array<i64: 1, 72>}, {transform_indices = @transform_3, window_bounds = array<i64: 16, 72>}]} {
    %c0 = arith.constant 0 : index
    %c0_0 = arith.constant 0 : index
    %0 = vector.load %arg1[%c0, %c0_0] : memref<16x216xbf16, #tpu.memory_space<vmem>>, vector<16x216xbf16>
    %c0_1 = arith.constant 0 : index
    %c0_2 = arith.constant 0 : index
    %1 = vector.load %arg2[%c0_1, %c0_2] : memref<216x72xbf16, #tpu.memory_space<vmem>>, vector<216x72xbf16>
    %cst = arith.constant dense<0.000000e+00> : vector<16x72xf32>
    %2 = tpu.matmul %0, %1, %cst {dimension_numbers = #tpu.dot_dimension_numbers<[1], [0], [0], [1], [0, 0, 1, 1], [], []>} : vector<16x216xbf16>, vector<216x72xbf16>, vector<16x72xf32> -> vector<16x72xf32>
    %c0_3 = arith.constant 0 : index
    %c0_4 = arith.constant 0 : index
    %3 = vector.load %arg3[%c0_3, %c0_4] : memref<1x72xf32, #tpu.memory_space<vmem>>, vector<1x72xf32>
    %4 = vector.broadcast %3 : vector<1x72xf32> to vector<16x72xf32>
    %5 = arith.addf %2, %4 : vector<16x72xf32>
    %c0_5 = arith.constant 0 : index
    %c0_6 = arith.constant 0 : index
    %6 = vector.load %arg4[%c0_5, %c0_6] : memref<16x72xf32, #tpu.memory_space<vmem>>, vector<16x72xf32>
    tpu.vector_store %arg4[%c0_5, %c0_6], %5 {strides = array<i32>} : memref<16x72xf32, #tpu.memory_space<vmem>>, vector<16x72xf32>,
    return
  }
  func.func @transform_0(%arg0: i32) -> (i32, i32) {
    %c0_i32 = arith.constant 0 : i32
    %c0_i32_0 = arith.constant 0 : i32
    return %arg0, %c0_i32 : i32, i32
  }
  func.func @transform_1(%arg0: i32) -> (i32, i32) {
    %c0_i32 = arith.constant 0 : i32
    %c0_i32_0 = arith.constant 0 : i32
    %c0_i32_1 = arith.constant 0 : i32
    return %c0_i32, %c0_i32_0 : i32, i32
  }
  func.func @transform_2(%arg0: i32) -> (i32, i32) {
    %c0_i32 = arith.constant 0 : i32
    %c0_i32_0 = arith.constant 0 : i32
    %c0_i32_1 = arith.constant 0 : i32
    return %c0_i32, %c0_i32_0 : i32, i32
  }
  func.func @transform_3(%arg0: i32) -> (i32, i32) {
    %c0_i32 = arith.constant 0 : i32
    %c0_i32_0 = arith.constant 0 : i32
    return %arg0, %c0_i32 : i32, i32
  }
}

module attributes {stable_mosaic.version = 11 : i64} {
  func.func @kernel(%arg0: i32, %arg1: memref<128x18xbf16, #tpu.memory_space<vmem>>, %arg2: memref<18x16xbf16, #tpu.memory_space<vmem>>, %arg3: memref<1x16xf32, #tpu.memory_space<vmem>>, %arg4: memref<128x16xbf16, #tpu.memory_space<vmem>>) attributes {dimension_semantics = [#tpu.dimension_semantics<parallel>], iteration_bounds = array<i64: 2>, scalar_prefetch = 0 : i64, scratch_operands = 0 : i64, tpu.core_type = #tpu.core_type<tc>, window_params = [{transform_indices = @transform_0, window_bounds = array<i64: 128, 18>}, {pipeline_mode = #tpu.pipeline_mode<synchronous>, transform_indices = @transform_1, window_bounds = array<i64: 18, 16>}, {pipeline_mode = #tpu.pipeline_mode<synchronous>, transform_indices = @transform_2, window_bounds = array<i64: 1, 16>}, {transform_indices = @transform_3, window_bounds = array<i64: 128, 16>}]} {
    %c0 = arith.constant 0 : index
    %c0_0 = arith.constant 0 : index
    %0 = vector.load %arg1[%c0, %c0_0] : memref<128x18xbf16, #tpu.memory_space<vmem>>, vector<128x18xbf16>
    %c0_1 = arith.constant 0 : index
    %c0_2 = arith.constant 0 : index
    %1 = vector.load %arg2[%c0_1, %c0_2] : memref<18x16xbf16, #tpu.memory_space<vmem>>, vector<18x16xbf16>
    %cst = arith.constant dense<0.000000e+00> : vector<128x16xf32>
    %2 = tpu.matmul %0, %1, %cst {dimension_numbers = #tpu.dot_dimension_numbers<[1], [0], [0], [1], [0, 0, 1, 1], [], []>} : vector<128x18xbf16>, vector<18x16xbf16>, vector<128x16xf32> -> vector<128x16xf32>
    %c0_3 = arith.constant 0 : index
    %c0_4 = arith.constant 0 : index
    %3 = vector.load %arg3[%c0_3, %c0_4] : memref<1x16xf32, #tpu.memory_space<vmem>>, vector<1x16xf32>
    %4 = vector.broadcast %3 : vector<1x16xf32> to vector<128x16xf32>
    %5 = arith.addf %2, %4 : vector<128x16xf32>
    %cst_5 = arith.constant 0.000000e+00 : f32
    %6 = vector.broadcast %cst_5 : f32 to vector<128x16xf32>
    %7 = arith.maximumf %5, %6 : vector<128x16xf32>
    %8 = arith.truncf %7 : vector<128x16xf32> to vector<128x16xbf16>
    %c0_6 = arith.constant 0 : index
    %c0_7 = arith.constant 0 : index
    %9 = vector.load %arg4[%c0_6, %c0_7] : memref<128x16xbf16, #tpu.memory_space<vmem>>, vector<128x16xbf16>
    tpu.vector_store %arg4[%c0_6, %c0_7], %8 {strides = array<i32>} : memref<128x16xbf16, #tpu.memory_space<vmem>>, vector<128x16xbf16>,
    return
  }
  func.func @transform_0(%arg0: i32) -> (i32, i32) {
    %c0_i32 = arith.constant 0 : i32
    %c0_i32_0 = arith.constant 0 : i32
    return %arg0, %c0_i32 : i32, i32
  }
  func.func @transform_1(%arg0: i32) -> (i32, i32) {
    %c0_i32 = arith.constant 0 : i32
    %c0_i32_0 = arith.constant 0 : i32
    %c0_i32_1 = arith.constant 0 : i32
    return %c0_i32, %c0_i32_0 : i32, i32
  }
  func.func @transform_2(%arg0: i32) -> (i32, i32) {
    %c0_i32 = arith.constant 0 : i32
    %c0_i32_0 = arith.constant 0 : i32
    %c0_i32_1 = arith.constant 0 : i32
    return %c0_i32, %c0_i32_0 : i32, i32
  }
  func.func @transform_3(%arg0: i32) -> (i32, i32) {
    %c0_i32 = arith.constant 0 : i32
    %c0_i32_0 = arith.constant 0 : i32
    return %arg0, %c0_i32 : i32, i32
  }
}

module attributes {stable_mosaic.version = 11 : i64} {
  func.func @kernel(%arg0: i32, %arg1: memref<32x144xbf16, #tpu.memory_space<vmem>>, %arg2: memref<144x32xbf16, #tpu.memory_space<vmem>>, %arg3: memref<1x32xf32, #tpu.memory_space<vmem>>, %arg4: memref<32x32xbf16, #tpu.memory_space<vmem>>) attributes {dimension_semantics = [#tpu.dimension_semantics<parallel>], iteration_bounds = array<i64: 2>, scalar_prefetch = 0 : i64, scratch_operands = 0 : i64, tpu.core_type = #tpu.core_type<tc>, window_params = [{transform_indices = @transform_0, window_bounds = array<i64: 32, 144>}, {pipeline_mode = #tpu.pipeline_mode<synchronous>, transform_indices = @transform_1, window_bounds = array<i64: 144, 32>}, {pipeline_mode = #tpu.pipeline_mode<synchronous>, transform_indices = @transform_2, window_bounds = array<i64: 1, 32>}, {transform_indices = @transform_3, window_bounds = array<i64: 32, 32>}]} {
    %c0 = arith.constant 0 : index
    %c0_0 = arith.constant 0 : index
    %0 = vector.load %arg1[%c0, %c0_0] : memref<32x144xbf16, #tpu.memory_space<vmem>>, vector<32x144xbf16>
    %c0_1 = arith.constant 0 : index
    %c0_2 = arith.constant 0 : index
    %1 = vector.load %arg2[%c0_1, %c0_2] : memref<144x32xbf16, #tpu.memory_space<vmem>>, vector<144x32xbf16>
    %cst = arith.constant dense<0.000000e+00> : vector<32x32xf32>
    %2 = tpu.matmul %0, %1, %cst {dimension_numbers = #tpu.dot_dimension_numbers<[1], [0], [0], [1], [0, 0, 1, 1], [], []>} : vector<32x144xbf16>, vector<144x32xbf16>, vector<32x32xf32> -> vector<32x32xf32>
    %c0_3 = arith.constant 0 : index
    %c0_4 = arith.constant 0 : index
    %3 = vector.load %arg3[%c0_3, %c0_4] : memref<1x32xf32, #tpu.memory_space<vmem>>, vector<1x32xf32>
    %4 = vector.broadcast %3 : vector<1x32xf32> to vector<32x32xf32>
    %5 = arith.addf %2, %4 : vector<32x32xf32>
    %cst_5 = arith.constant 0.000000e+00 : f32
    %6 = vector.broadcast %cst_5 : f32 to vector<32x32xf32>
    %7 = arith.maximumf %5, %6 : vector<32x32xf32>
    %8 = arith.truncf %7 : vector<32x32xf32> to vector<32x32xbf16>
    %c0_6 = arith.constant 0 : index
    %c0_7 = arith.constant 0 : index
    %9 = vector.load %arg4[%c0_6, %c0_7] : memref<32x32xbf16, #tpu.memory_space<vmem>>, vector<32x32xbf16>
    tpu.vector_store %arg4[%c0_6, %c0_7], %8 {strides = array<i32>} : memref<32x32xbf16, #tpu.memory_space<vmem>>, vector<32x32xbf16>,
    return
  }
  func.func @transform_0(%arg0: i32) -> (i32, i32) {
    %c0_i32 = arith.constant 0 : i32
    %c0_i32_0 = arith.constant 0 : i32
    return %arg0, %c0_i32 : i32, i32
  }
  func.func @transform_1(%arg0: i32) -> (i32, i32) {
    %c0_i32 = arith.constant 0 : i32
    %c0_i32_0 = arith.constant 0 : i32
    %c0_i32_1 = arith.constant 0 : i32
    return %c0_i32, %c0_i32_0 : i32, i32
  }
  func.func @transform_2(%arg0: i32) -> (i32, i32) {
    %c0_i32 = arith.constant 0 : i32
    %c0_i32_0 = arith.constant 0 : i32
    %c0_i32_1 = arith.constant 0 : i32
    return %c0_i32, %c0_i32_0 : i32, i32
  }
  func.func @transform_3(%arg0: i32) -> (i32, i32) {
    %c0_i32 = arith.constant 0 : i32
    %c0_i32_0 = arith.constant 0 : i32
    return %arg0, %c0_i32 : i32, i32
  }
}

module attributes {stable_mosaic.version = 11 : i64} {
  func.func @_corr_kernel(%arg0: i32, %arg1: i32, %arg2: memref<1x16x32xbf16, #tpu.memory_space<vmem>>, %arg3: memref<1x16x32xbf16, #tpu.memory_space<vmem>>, %arg4: memref<1x16x16xbf16, #tpu.memory_space<vmem>>) attributes {dimension_semantics = [#tpu.dimension_semantics<parallel>, #tpu.dimension_semantics<parallel>], iteration_bounds = array<i64: 2, 1>, scalar_prefetch = 0 : i64, scratch_operands = 0 : i64, tpu.core_type = #tpu.core_type<tc>, window_params = [{transform_indices = @transform_0, window_bounds = array<i64: 1, 16, 32>}, {transform_indices = @transform_1, window_bounds = array<i64: 1, 16, 32>}, {transform_indices = @transform_2, window_bounds = array<i64: 1, 16, 16>}]} {
    %c0 = arith.constant 0 : index
    %c0_0 = arith.constant 0 : index
    %c0_1 = arith.constant 0 : index
    %0 = vector.load %arg2[%c0, %c0_0, %c0_1] : memref<1x16x32xbf16, #tpu.memory_space<vmem>>, vector<1x16x32xbf16>
    %1 = vector.shape_cast %0 : vector<1x16x32xbf16> to vector<16x32xbf16>
    %c0_2 = arith.constant 0 : index
    %c0_3 = arith.constant 0 : index
    %c0_4 = arith.constant 0 : index
    %2 = vector.load %arg3[%c0_2, %c0_3, %c0_4] : memref<1x16x32xbf16, #tpu.memory_space<vmem>>, vector<1x16x32xbf16>
    %3 = vector.shape_cast %2 : vector<1x16x32xbf16> to vector<16x32xbf16>
    %cst = arith.constant dense<0.000000e+00> : vector<16x16xf32>
    %4 = tpu.matmul %1, %3, %cst {dimension_numbers = #tpu.dot_dimension_numbers<[1], [1], [0], [0], [0, 0, 1, 0], [], []>} : vector<16x32xbf16>, vector<16x32xbf16>, vector<16x16xf32> -> vector<16x16xf32>
    %cst_5 = arith.constant 0.176776692 : f32
    %5 = vector.broadcast %cst_5 : f32 to vector<16x16xf32>
    %6 = arith.mulf %5, %4 : vector<16x16xf32>
    %7 = arith.truncf %6 : vector<16x16xf32> to vector<16x16xbf16>
    %c0_6 = arith.constant 0 : index
    %c0_7 = arith.constant 0 : index
    %c0_8 = arith.constant 0 : index
    %8 = vector.load %arg4[%c0_6, %c0_7, %c0_8] : memref<1x16x16xbf16, #tpu.memory_space<vmem>>, vector<1x16x16xbf16>
    %9 = vector.shape_cast %8 : vector<1x16x16xbf16> to vector<16x16xbf16>
    %10 = vector.shape_cast %7 : vector<16x16xbf16> to vector<1x16x16xbf16>
    tpu.vector_store %arg4[%c0_6, %c0_7, %c0_8], %10 {strides = array<i32>} : memref<1x16x16xbf16, #tpu.memory_space<vmem>>, vector<1x16x16xbf16>,
    return
  }
  func.func @transform_0(%arg0: i32, %arg1: i32) -> (i32, i32, i32) {
    %c0_i32 = arith.constant 0 : i32
    %c0_i32_0 = arith.constant 0 : i32
    return %arg0, %arg1, %c0_i32 : i32, i32, i32
  }
  func.func @transform_1(%arg0: i32, %arg1: i32) -> (i32, i32, i32) {
    %c0_i32 = arith.constant 0 : i32
    %c0_i32_0 = arith.constant 0 : i32
    %c0_i32_1 = arith.constant 0 : i32
    return %arg0, %c0_i32, %c0_i32_0 : i32, i32, i32
  }
  func.func @transform_2(%arg0: i32, %arg1: i32) -> (i32, i32, i32) {
    %c0_i32 = arith.constant 0 : i32
    %c0_i32_0 = arith.constant 0 : i32
    return %arg0, %arg1, %c0_i32 : i32, i32, i32
  }
}

module attributes {stable_mosaic.version = 11 : i64} {
  func.func @kernel(%arg0: i32, %arg1: memref<16x144xbf16, #tpu.memory_space<vmem>>, %arg2: memref<144x32xbf16, #tpu.memory_space<vmem>>, %arg3: memref<1x32xf32, #tpu.memory_space<vmem>>, %arg4: memref<16x32xf32, #tpu.memory_space<vmem>>) attributes {dimension_semantics = [#tpu.dimension_semantics<parallel>], iteration_bounds = array<i64: 2>, scalar_prefetch = 0 : i64, scratch_operands = 0 : i64, tpu.core_type = #tpu.core_type<tc>, window_params = [{transform_indices = @transform_0, window_bounds = array<i64: 16, 144>}, {pipeline_mode = #tpu.pipeline_mode<synchronous>, transform_indices = @transform_1, window_bounds = array<i64: 144, 32>}, {pipeline_mode = #tpu.pipeline_mode<synchronous>, transform_indices = @transform_2, window_bounds = array<i64: 1, 32>}, {transform_indices = @transform_3, window_bounds = array<i64: 16, 32>}]} {
    %c0 = arith.constant 0 : index
    %c0_0 = arith.constant 0 : index
    %0 = vector.load %arg1[%c0, %c0_0] : memref<16x144xbf16, #tpu.memory_space<vmem>>, vector<16x144xbf16>
    %c0_1 = arith.constant 0 : index
    %c0_2 = arith.constant 0 : index
    %1 = vector.load %arg2[%c0_1, %c0_2] : memref<144x32xbf16, #tpu.memory_space<vmem>>, vector<144x32xbf16>
    %cst = arith.constant dense<0.000000e+00> : vector<16x32xf32>
    %2 = tpu.matmul %0, %1, %cst {dimension_numbers = #tpu.dot_dimension_numbers<[1], [0], [0], [1], [0, 0, 1, 1], [], []>} : vector<16x144xbf16>, vector<144x32xbf16>, vector<16x32xf32> -> vector<16x32xf32>
    %c0_3 = arith.constant 0 : index
    %c0_4 = arith.constant 0 : index
    %3 = vector.load %arg3[%c0_3, %c0_4] : memref<1x32xf32, #tpu.memory_space<vmem>>, vector<1x32xf32>
    %4 = vector.broadcast %3 : vector<1x32xf32> to vector<16x32xf32>
    %5 = arith.addf %2, %4 : vector<16x32xf32>
    %c0_5 = arith.constant 0 : index
    %c0_6 = arith.constant 0 : index
    %6 = vector.load %arg4[%c0_5, %c0_6] : memref<16x32xf32, #tpu.memory_space<vmem>>, vector<16x32xf32>
    tpu.vector_store %arg4[%c0_5, %c0_6], %5 {strides = array<i32>} : memref<16x32xf32, #tpu.memory_space<vmem>>, vector<16x32xf32>,
    return
  }
  func.func @transform_0(%arg0: i32) -> (i32, i32) {
    %c0_i32 = arith.constant 0 : i32
    %c0_i32_0 = arith.constant 0 : i32
    return %arg0, %c0_i32 : i32, i32
  }
  func.func @transform_1(%arg0: i32) -> (i32, i32) {
    %c0_i32 = arith.constant 0 : i32
    %c0_i32_0 = arith.constant 0 : i32
    %c0_i32_1 = arith.constant 0 : i32
    return %c0_i32, %c0_i32_0 : i32, i32
  }
  func.func @transform_2(%arg0: i32) -> (i32, i32) {
    %c0_i32 = arith.constant 0 : i32
    %c0_i32_0 = arith.constant 0 : i32
    %c0_i32_1 = arith.constant 0 : i32
    return %c0_i32, %c0_i32_0 : i32, i32
  }
  func.func @transform_3(%arg0: i32) -> (i32, i32) {
    %c0_i32 = arith.constant 0 : i32
    %c0_i32_0 = arith.constant 0 : i32
    return %arg0, %c0_i32 : i32, i32
  }
}

module attributes {stable_mosaic.version = 11 : i64} {
  func.func @kernel(%arg0: i32, %arg1: memref<16x18xbf16, #tpu.memory_space<vmem>>, %arg2: memref<18x32xbf16, #tpu.memory_space<vmem>>, %arg3: memref<1x32xf32, #tpu.memory_space<vmem>>, %arg4: memref<16x32xf32, #tpu.memory_space<vmem>>, %arg5: memref<16x32xbf16, #tpu.memory_space<vmem>>) attributes {dimension_semantics = [#tpu.dimension_semantics<parallel>], iteration_bounds = array<i64: 2>, scalar_prefetch = 0 : i64, scratch_operands = 0 : i64, tpu.core_type = #tpu.core_type<tc>, window_params = [{transform_indices = @transform_0, window_bounds = array<i64: 16, 18>}, {pipeline_mode = #tpu.pipeline_mode<synchronous>, transform_indices = @transform_1, window_bounds = array<i64: 18, 32>}, {pipeline_mode = #tpu.pipeline_mode<synchronous>, transform_indices = @transform_2, window_bounds = array<i64: 1, 32>}, {transform_indices = @transform_3, window_bounds = array<i64: 16, 32>}, {transform_indices = @transform_4, window_bounds = array<i64: 16, 32>}]} {
    %c0 = arith.constant 0 : index
    %c0_0 = arith.constant 0 : index
    %0 = vector.load %arg1[%c0, %c0_0] : memref<16x18xbf16, #tpu.memory_space<vmem>>, vector<16x18xbf16>
    %c0_1 = arith.constant 0 : index
    %c0_2 = arith.constant 0 : index
    %1 = vector.load %arg2[%c0_1, %c0_2] : memref<18x32xbf16, #tpu.memory_space<vmem>>, vector<18x32xbf16>
    %cst = arith.constant dense<0.000000e+00> : vector<16x32xf32>
    %2 = tpu.matmul %0, %1, %cst {dimension_numbers = #tpu.dot_dimension_numbers<[1], [0], [0], [1], [0, 0, 1, 1], [], []>} : vector<16x18xbf16>, vector<18x32xbf16>, vector<16x32xf32> -> vector<16x32xf32>
    %c0_3 = arith.constant 0 : index
    %c0_4 = arith.constant 0 : index
    %3 = vector.load %arg3[%c0_3, %c0_4] : memref<1x32xf32, #tpu.memory_space<vmem>>, vector<1x32xf32>
    %4 = vector.broadcast %3 : vector<1x32xf32> to vector<16x32xf32>
    %5 = arith.addf %2, %4 : vector<16x32xf32>
    %c0_5 = arith.constant 0 : index
    %c0_6 = arith.constant 0 : index
    %6 = vector.load %arg4[%c0_5, %c0_6] : memref<16x32xf32, #tpu.memory_space<vmem>>, vector<16x32xf32>
    %7 = arith.addf %5, %6 : vector<16x32xf32>
    %cst_7 = arith.constant 0.000000e+00 : f32
    %8 = vector.broadcast %cst_7 : f32 to vector<16x32xf32>
    %9 = arith.maximumf %7, %8 : vector<16x32xf32>
    %10 = arith.truncf %9 : vector<16x32xf32> to vector<16x32xbf16>
    %c0_8 = arith.constant 0 : index
    %c0_9 = arith.constant 0 : index
    %11 = vector.load %arg5[%c0_8, %c0_9] : memref<16x32xbf16, #tpu.memory_space<vmem>>, vector<16x32xbf16>
    tpu.vector_store %arg5[%c0_8, %c0_9], %10 {strides = array<i32>} : memref<16x32xbf16, #tpu.memory_space<vmem>>, vector<16x32xbf16>,
    return
  }
  func.func @transform_0(%arg0: i32) -> (i32, i32) {
    %c0_i32 = arith.constant 0 : i32
    %c0_i32_0 = arith.constant 0 : i32
    return %arg0, %c0_i32 : i32, i32
  }
  func.func @transform_1(%arg0: i32) -> (i32, i32) {
    %c0_i32 = arith.constant 0 : i32
    %c0_i32_0 = arith.constant 0 : i32
    %c0_i32_1 = arith.constant 0 : i32
    return %c0_i32, %c0_i32_0 : i32, i32
  }
  func.func @transform_2(%arg0: i32) -> (i32, i32) {
    %c0_i32 = arith.constant 0 : i32
    %c0_i32_0 = arith.constant 0 : i32
    %c0_i32_1 = arith.constant 0 : i32
    return %c0_i32, %c0_i32_0 : i32, i32
  }
  func.func @transform_3(%arg0: i32) -> (i32, i32) {
    %c0_i32 = arith.constant 0 : i32
    %c0_i32_0 = arith.constant 0 : i32
    return %arg0, %c0_i32 : i32, i32
  }
  func.func @transform_4(%arg0: i32) -> (i32, i32) {
    %c0_i32 = arith.constant 0 : i32
    %c0_i32_0 = arith.constant 0 : i32
    return %arg0, %c0_i32 : i32, i32
  }
}

module attributes {stable_mosaic.version = 11 : i64} {
  func.func @kernel(%arg0: i32, %arg1: memref<16x216xbf16, #tpu.memory_space<vmem>>, %arg2: memref<216x48xbf16, #tpu.memory_space<vmem>>, %arg3: memref<16x288xbf16, #tpu.memory_space<vmem>>, %arg4: memref<288x48xbf16, #tpu.memory_space<vmem>>, %arg5: memref<1x48xf32, #tpu.memory_space<vmem>>, %arg6: memref<16x48xf32, #tpu.memory_space<vmem>>, %arg7: memref<16x48xf32, #tpu.memory_space<vmem>>) attributes {dimension_semantics = [#tpu.dimension_semantics<parallel>], iteration_bounds = array<i64: 2>, scalar_prefetch = 0 : i64, scratch_operands = 0 : i64, tpu.core_type = #tpu.core_type<tc>, window_params = [{transform_indices = @transform_0, window_bounds = array<i64: 16, 216>}, {pipeline_mode = #tpu.pipeline_mode<synchronous>, transform_indices = @transform_1, window_bounds = array<i64: 216, 48>}, {transform_indices = @transform_2, window_bounds = array<i64: 16, 288>}, {pipeline_mode = #tpu.pipeline_mode<synchronous>, transform_indices = @transform_3, window_bounds = array<i64: 288, 48>}, {pipeline_mode = #tpu.pipeline_mode<synchronous>, transform_indices = @transform_4, window_bounds = array<i64: 1, 48>}, {transform_indices = @transform_5, window_bounds = array<i64: 16, 48>}, {transform_indices = @transform_6, window_bounds = array<i64: 16, 48>}]} {
    %c0 = arith.constant 0 : index
    %c0_0 = arith.constant 0 : index
    %0 = vector.load %arg1[%c0, %c0_0] : memref<16x216xbf16, #tpu.memory_space<vmem>>, vector<16x216xbf16>
    %c0_1 = arith.constant 0 : index
    %c0_2 = arith.constant 0 : index
    %1 = vector.load %arg2[%c0_1, %c0_2] : memref<216x48xbf16, #tpu.memory_space<vmem>>, vector<216x48xbf16>
    %cst = arith.constant dense<0.000000e+00> : vector<16x48xf32>
    %2 = tpu.matmul %0, %1, %cst {dimension_numbers = #tpu.dot_dimension_numbers<[1], [0], [0], [1], [0, 0, 1, 1], [], []>} : vector<16x216xbf16>, vector<216x48xbf16>, vector<16x48xf32> -> vector<16x48xf32>
    %c0_3 = arith.constant 0 : index
    %c0_4 = arith.constant 0 : index
    %3 = vector.load %arg3[%c0_3, %c0_4] : memref<16x288xbf16, #tpu.memory_space<vmem>>, vector<16x288xbf16>
    %c0_5 = arith.constant 0 : index
    %c0_6 = arith.constant 0 : index
    %4 = vector.load %arg4[%c0_5, %c0_6] : memref<288x48xbf16, #tpu.memory_space<vmem>>, vector<288x48xbf16>
    %cst_7 = arith.constant dense<0.000000e+00> : vector<16x48xf32>
    %5 = tpu.matmul %3, %4, %cst_7 {dimension_numbers = #tpu.dot_dimension_numbers<[1], [0], [0], [1], [0, 0, 1, 1], [], []>} : vector<16x288xbf16>, vector<288x48xbf16>, vector<16x48xf32> -> vector<16x48xf32>
    %6 = arith.addf %2, %5 : vector<16x48xf32>
    %c0_8 = arith.constant 0 : index
    %c0_9 = arith.constant 0 : index
    %7 = vector.load %arg5[%c0_8, %c0_9] : memref<1x48xf32, #tpu.memory_space<vmem>>, vector<1x48xf32>
    %8 = vector.broadcast %7 : vector<1x48xf32> to vector<16x48xf32>
    %9 = arith.addf %6, %8 : vector<16x48xf32>
    %c0_10 = arith.constant 0 : index
    %c0_11 = arith.constant 0 : index
    %10 = vector.load %arg6[%c0_10, %c0_11] : memref<16x48xf32, #tpu.memory_space<vmem>>, vector<16x48xf32>
    %11 = arith.addf %9, %10 : vector<16x48xf32>
    %12 = arith.negf %11 : vector<16x48xf32>
    %13 = math.exp %12 : vector<16x48xf32>
    %cst_12 = arith.constant 1.000000e+00 : f32
    %14 = vector.broadcast %cst_12 : f32 to vector<16x48xf32>
    %15 = arith.addf %14, %13 : vector<16x48xf32>
    %16 = arith.divf %14, %15 : vector<16x48xf32>
    %c0_13 = arith.constant 0 : index
    %c0_14 = arith.constant 0 : index
    %17 = vector.load %arg7[%c0_13, %c0_14] : memref<16x48xf32, #tpu.memory_space<vmem>>, vector<16x48xf32>
    tpu.vector_store %arg7[%c0_13, %c0_14], %16 {strides = array<i32>} : memref<16x48xf32, #tpu.memory_space<vmem>>, vector<16x48xf32>,
    return
  }
  func.func @transform_0(%arg0: i32) -> (i32, i32) {
    %c0_i32 = arith.constant 0 : i32
    %c0_i32_0 = arith.constant 0 : i32
    return %arg0, %c0_i32 : i32, i32
  }
  func.func @transform_1(%arg0: i32) -> (i32, i32) {
    %c0_i32 = arith.constant 0 : i32
    %c0_i32_0 = arith.constant 0 : i32
    %c0_i32_1 = arith.constant 0 : i32
    return %c0_i32, %c0_i32_0 : i32, i32
  }
  func.func @transform_2(%arg0: i32) -> (i32, i32) {
    %c0_i32 = arith.constant 0 : i32
    %c0_i32_0 = arith.constant 0 : i32
    return %arg0, %c0_i32 : i32, i32
  }
  func.func @transform_3(%arg0: i32) -> (i32, i32) {
    %c0_i32 = arith.constant 0 : i32
    %c0_i32_0 = arith.constant 0 : i32
    %c0_i32_1 = arith.constant 0 : i32
    return %c0_i32, %c0_i32_0 : i32, i32
  }
  func.func @transform_4(%arg0: i32) -> (i32, i32) {
    %c0_i32 = arith.constant 0 : i32
    %c0_i32_0 = arith.constant 0 : i32
    %c0_i32_1 = arith.constant 0 : i32
    return %c0_i32, %c0_i32_0 : i32, i32
  }
  func.func @transform_5(%arg0: i32) -> (i32, i32) {
    %c0_i32 = arith.constant 0 : i32
    %c0_i32_0 = arith.constant 0 : i32
    return %arg0, %c0_i32 : i32, i32
  }
  func.func @transform_6(%arg0: i32) -> (i32, i32) {
    %c0_i32 = arith.constant 0 : i32
    %c0_i32_0 = arith.constant 0 : i32
    return %arg0, %c0_i32 : i32, i32
  }
}

module attributes {stable_mosaic.version = 11 : i64} {
  func.func @kernel(%arg0: i32, %arg1: memref<16x216xbf16, #tpu.memory_space<vmem>>, %arg2: memref<216x24xbf16, #tpu.memory_space<vmem>>, %arg3: memref<16x288xbf16, #tpu.memory_space<vmem>>, %arg4: memref<288x24xbf16, #tpu.memory_space<vmem>>, %arg5: memref<1x24xf32, #tpu.memory_space<vmem>>, %arg6: memref<16x24xf32, #tpu.memory_space<vmem>>, %arg7: memref<16x24xf32, #tpu.memory_space<vmem>>, %arg8: memref<16x24xf32, #tpu.memory_space<vmem>>, %arg9: memref<16x24xf32, #tpu.memory_space<vmem>>) attributes {dimension_semantics = [#tpu.dimension_semantics<parallel>], iteration_bounds = array<i64: 2>, scalar_prefetch = 0 : i64, scratch_operands = 0 : i64, tpu.core_type = #tpu.core_type<tc>, window_params = [{transform_indices = @transform_0, window_bounds = array<i64: 16, 216>}, {pipeline_mode = #tpu.pipeline_mode<synchronous>, transform_indices = @transform_1, window_bounds = array<i64: 216, 24>}, {transform_indices = @transform_2, window_bounds = array<i64: 16, 288>}, {pipeline_mode = #tpu.pipeline_mode<synchronous>, transform_indices = @transform_3, window_bounds = array<i64: 288, 24>}, {pipeline_mode = #tpu.pipeline_mode<synchronous>, transform_indices = @transform_4, window_bounds = array<i64: 1, 24>}, {transform_indices = @transform_5, window_bounds = array<i64: 16, 24>}, {transform_indices = @transform_6, window_bounds = array<i64: 16, 24>}, {transform_indices = @transform_7, window_bounds = array<i64: 16, 24>}, {transform_indices = @transform_8, window_bounds = array<i64: 16, 24>}]} {
    %c0 = arith.constant 0 : index
    %c0_0 = arith.constant 0 : index
    %0 = vector.load %arg1[%c0, %c0_0] : memref<16x216xbf16, #tpu.memory_space<vmem>>, vector<16x216xbf16>
    %c0_1 = arith.constant 0 : index
    %c0_2 = arith.constant 0 : index
    %1 = vector.load %arg2[%c0_1, %c0_2] : memref<216x24xbf16, #tpu.memory_space<vmem>>, vector<216x24xbf16>
    %cst = arith.constant dense<0.000000e+00> : vector<16x24xf32>
    %2 = tpu.matmul %0, %1, %cst {dimension_numbers = #tpu.dot_dimension_numbers<[1], [0], [0], [1], [0, 0, 1, 1], [], []>} : vector<16x216xbf16>, vector<216x24xbf16>, vector<16x24xf32> -> vector<16x24xf32>
    %c0_3 = arith.constant 0 : index
    %c0_4 = arith.constant 0 : index
    %3 = vector.load %arg3[%c0_3, %c0_4] : memref<16x288xbf16, #tpu.memory_space<vmem>>, vector<16x288xbf16>
    %c0_5 = arith.constant 0 : index
    %c0_6 = arith.constant 0 : index
    %4 = vector.load %arg4[%c0_5, %c0_6] : memref<288x24xbf16, #tpu.memory_space<vmem>>, vector<288x24xbf16>
    %cst_7 = arith.constant dense<0.000000e+00> : vector<16x24xf32>
    %5 = tpu.matmul %3, %4, %cst_7 {dimension_numbers = #tpu.dot_dimension_numbers<[1], [0], [0], [1], [0, 0, 1, 1], [], []>} : vector<16x288xbf16>, vector<288x24xbf16>, vector<16x24xf32> -> vector<16x24xf32>
    %6 = arith.addf %2, %5 : vector<16x24xf32>
    %c0_8 = arith.constant 0 : index
    %c0_9 = arith.constant 0 : index
    %7 = vector.load %arg5[%c0_8, %c0_9] : memref<1x24xf32, #tpu.memory_space<vmem>>, vector<1x24xf32>
    %8 = vector.broadcast %7 : vector<1x24xf32> to vector<16x24xf32>
    %9 = arith.addf %6, %8 : vector<16x24xf32>
    %c0_10 = arith.constant 0 : index
    %c0_11 = arith.constant 0 : index
    %10 = vector.load %arg6[%c0_10, %c0_11] : memref<16x24xf32, #tpu.memory_space<vmem>>, vector<16x24xf32>
    %11 = arith.addf %9, %10 : vector<16x24xf32>
    %c0_12 = arith.constant 0 : index
    %c0_13 = arith.constant 0 : index
    %12 = vector.load %arg7[%c0_12, %c0_13] : memref<16x24xf32, #tpu.memory_space<vmem>>, vector<16x24xf32>
    %c0_14 = arith.constant 0 : index
    %c0_15 = arith.constant 0 : index
    %13 = vector.load %arg8[%c0_14, %c0_15] : memref<16x24xf32, #tpu.memory_space<vmem>>, vector<16x24xf32>
    %cst_16 = arith.constant 1.000000e+00 : f32
    %14 = vector.broadcast %cst_16 : f32 to vector<16x24xf32>
    %15 = arith.subf %14, %12 : vector<16x24xf32>
    %16 = arith.mulf %15, %13 : vector<16x24xf32>
    %17 = math.tanh %11 : vector<16x24xf32>
    %18 = arith.mulf %12, %17 : vector<16x24xf32>
    %19 = arith.addf %16, %18 : vector<16x24xf32>
    %c0_17 = arith.constant 0 : index
    %c0_18 = arith.constant 0 : index
    %20 = vector.load %arg9[%c0_17, %c0_18] : memref<16x24xf32, #tpu.memory_space<vmem>>, vector<16x24xf32>
    tpu.vector_store %arg9[%c0_17, %c0_18], %19 {strides = array<i32>} : memref<16x24xf32, #tpu.memory_space<vmem>>, vector<16x24xf32>,
    return
  }
  func.func @transform_0(%arg0: i32) -> (i32, i32) {
    %c0_i32 = arith.constant 0 : i32
    %c0_i32_0 = arith.constant 0 : i32
    return %arg0, %c0_i32 : i32, i32
  }
  func.func @transform_1(%arg0: i32) -> (i32, i32) {
    %c0_i32 = arith.constant 0 : i32
    %c0_i32_0 = arith.constant 0 : i32
    %c0_i32_1 = arith.constant 0 : i32
    return %c0_i32, %c0_i32_0 : i32, i32
  }
  func.func @transform_2(%arg0: i32) -> (i32, i32) {
    %c0_i32 = arith.constant 0 : i32
    %c0_i32_0 = arith.constant 0 : i32
    return %arg0, %c0_i32 : i32, i32
  }
  func.func @transform_3(%arg0: i32) -> (i32, i32) {
    %c0_i32 = arith.constant 0 : i32
    %c0_i32_0 = arith.constant 0 : i32
    %c0_i32_1 = arith.constant 0 : i32
    return %c0_i32, %c0_i32_0 : i32, i32
  }
  func.func @transform_4(%arg0: i32) -> (i32, i32) {
    %c0_i32 = arith.constant 0 : i32
    %c0_i32_0 = arith.constant 0 : i32
    %c0_i32_1 = arith.constant 0 : i32
    return %c0_i32, %c0_i32_0 : i32, i32
  }
  func.func @transform_5(%arg0: i32) -> (i32, i32) {
    %c0_i32 = arith.constant 0 : i32
    %c0_i32_0 = arith.constant 0 : i32
    return %arg0, %c0_i32 : i32, i32
  }
  func.func @transform_6(%arg0: i32) -> (i32, i32) {
    %c0_i32 = arith.constant 0 : i32
    %c0_i32_0 = arith.constant 0 : i32
    return %arg0, %c0_i32 : i32, i32
  }
  func.func @transform_7(%arg0: i32) -> (i32, i32) {
    %c0_i32 = arith.constant 0 : i32
    %c0_i32_0 = arith.constant 0 : i32
    return %arg0, %c0_i32 : i32, i32
  }
  func.func @transform_8(%arg0: i32) -> (i32, i32) {
    %c0_i32 = arith.constant 0 : i32
    %c0_i32_0 = arith.constant 0 : i32
    return %arg0, %c0_i32 : i32, i32
  }
}

module attributes {stable_mosaic.version = 11 : i64} {
  func.func @kernel(%arg0: i32, %arg1: memref<16x216xbf16, #tpu.memory_space<vmem>>, %arg2: memref<216x32xbf16, #tpu.memory_space<vmem>>, %arg3: memref<1x32xf32, #tpu.memory_space<vmem>>, %arg4: memref<32x2xbf16, #tpu.memory_space<vmem>>, %arg5: memref<1x2xf32, #tpu.memory_space<vmem>>, %arg6: memref<16x2xf32, #tpu.memory_space<vmem>>, %arg7: memref<16x2xf32, #tpu.memory_space<vmem>>) attributes {dimension_semantics = [#tpu.dimension_semantics<parallel>], iteration_bounds = array<i64: 2>, scalar_prefetch = 0 : i64, scratch_operands = 0 : i64, tpu.core_type = #tpu.core_type<tc>, window_params = [{transform_indices = @transform_0, window_bounds = array<i64: 16, 216>}, {pipeline_mode = #tpu.pipeline_mode<synchronous>, transform_indices = @transform_1, window_bounds = array<i64: 216, 32>}, {pipeline_mode = #tpu.pipeline_mode<synchronous>, transform_indices = @transform_2, window_bounds = array<i64: 1, 32>}, {pipeline_mode = #tpu.pipeline_mode<synchronous>, transform_indices = @transform_3, window_bounds = array<i64: 32, 2>}, {pipeline_mode = #tpu.pipeline_mode<synchronous>, transform_indices = @transform_4, window_bounds = array<i64: 1, 2>}, {transform_indices = @transform_5, window_bounds = array<i64: 16, 2>}, {transform_indices = @transform_6, window_bounds = array<i64: 16, 2>}]} {
    %c0 = arith.constant 0 : index
    %c0_0 = arith.constant 0 : index
    %0 = vector.load %arg1[%c0, %c0_0] : memref<16x216xbf16, #tpu.memory_space<vmem>>, vector<16x216xbf16>
    %c0_1 = arith.constant 0 : index
    %c0_2 = arith.constant 0 : index
    %1 = vector.load %arg2[%c0_1, %c0_2] : memref<216x32xbf16, #tpu.memory_space<vmem>>, vector<216x32xbf16>
    %cst = arith.constant dense<0.000000e+00> : vector<16x32xf32>
    %2 = tpu.matmul %0, %1, %cst {dimension_numbers = #tpu.dot_dimension_numbers<[1], [0], [0], [1], [0, 0, 1, 1], [], []>} : vector<16x216xbf16>, vector<216x32xbf16>, vector<16x32xf32> -> vector<16x32xf32>
    %c0_3 = arith.constant 0 : index
    %c0_4 = arith.constant 0 : index
    %3 = vector.load %arg3[%c0_3, %c0_4] : memref<1x32xf32, #tpu.memory_space<vmem>>, vector<1x32xf32>
    %4 = vector.broadcast %3 : vector<1x32xf32> to vector<16x32xf32>
    %5 = arith.addf %2, %4 : vector<16x32xf32>
    %cst_5 = arith.constant 0.000000e+00 : f32
    %6 = vector.broadcast %cst_5 : f32 to vector<16x32xf32>
    %7 = arith.maximumf %5, %6 : vector<16x32xf32>
    %8 = arith.truncf %7 : vector<16x32xf32> to vector<16x32xbf16>
    %c0_6 = arith.constant 0 : index
    %c0_7 = arith.constant 0 : index
    %9 = vector.load %arg6[%c0_6, %c0_7] : memref<16x2xf32, #tpu.memory_space<vmem>>, vector<16x2xf32>
    %c0_8 = arith.constant 0 : index
    %c0_9 = arith.constant 0 : index
    %10 = vector.load %arg5[%c0_8, %c0_9] : memref<1x2xf32, #tpu.memory_space<vmem>>, vector<1x2xf32>
    %11 = vector.broadcast %10 : vector<1x2xf32> to vector<16x2xf32>
    %12 = arith.addf %9, %11 : vector<16x2xf32>
    %c0_10 = arith.constant 0 : index
    %c0_11 = arith.constant 0 : index
    %13 = vector.load %arg4[%c0_10, %c0_11] : memref<32x2xbf16, #tpu.memory_space<vmem>>, vector<32x2xbf16>
    %cst_12 = arith.constant dense<0.000000e+00> : vector<16x2xf32>
    %14 = tpu.matmul %8, %13, %cst_12 {dimension_numbers = #tpu.dot_dimension_numbers<[1], [0], [0], [1], [0, 0, 1, 1], [], []>} : vector<16x32xbf16>, vector<32x2xbf16>, vector<16x2xf32> -> vector<16x2xf32>
    %15 = arith.addf %12, %14 : vector<16x2xf32>
    %c0_13 = arith.constant 0 : index
    %c0_14 = arith.constant 0 : index
    %16 = vector.load %arg7[%c0_13, %c0_14] : memref<16x2xf32, #tpu.memory_space<vmem>>, vector<16x2xf32>
    tpu.vector_store %arg7[%c0_13, %c0_14], %15 {strides = array<i32>} : memref<16x2xf32, #tpu.memory_space<vmem>>, vector<16x2xf32>,
    return
  }
  func.func @transform_0(%arg0: i32) -> (i32, i32) {
    %c0_i32 = arith.constant 0 : i32
    %c0_i32_0 = arith.constant 0 : i32
    return %arg0, %c0_i32 : i32, i32
  }
  func.func @transform_1(%arg0: i32) -> (i32, i32) {
    %c0_i32 = arith.constant 0 : i32
    %c0_i32_0 = arith.constant 0 : i32
    %c0_i32_1 = arith.constant 0 : i32
    return %c0_i32, %c0_i32_0 : i32, i32
  }
  func.func @transform_2(%arg0: i32) -> (i32, i32) {
    %c0_i32 = arith.constant 0 : i32
    %c0_i32_0 = arith.constant 0 : i32
    %c0_i32_1 = arith.constant 0 : i32
    return %c0_i32, %c0_i32_0 : i32, i32
  }
  func.func @transform_3(%arg0: i32) -> (i32, i32) {
    %c0_i32 = arith.constant 0 : i32
    %c0_i32_0 = arith.constant 0 : i32
    %c0_i32_1 = arith.constant 0 : i32
    return %c0_i32, %c0_i32_0 : i32, i32
  }
  func.func @transform_4(%arg0: i32) -> (i32, i32) {
    %c0_i32 = arith.constant 0 : i32
    %c0_i32_0 = arith.constant 0 : i32
    %c0_i32_1 = arith.constant 0 : i32
    return %c0_i32, %c0_i32_0 : i32, i32
  }
  func.func @transform_5(%arg0: i32) -> (i32, i32) {
    %c0_i32 = arith.constant 0 : i32
    %c0_i32_0 = arith.constant 0 : i32
    return %arg0, %c0_i32 : i32, i32
  }
  func.func @transform_6(%arg0: i32) -> (i32, i32) {
    %c0_i32 = arith.constant 0 : i32
    %c0_i32_0 = arith.constant 0 : i32
    return %arg0, %c0_i32 : i32, i32
  }
}

</mosaic_0001>

<bundles_post_ra>
// kernel: evflownet_forward.21
= control target key start
LH: loop header
LB: loop body
LE: loop exit
PB: predicated region body
PF: predicated region fallthrough
CT: control target
= control target key end

     0   :  { %s528_s12 = smov 0   ;;  %s572_s0 = inlined_call_operand.vmem [shape: bf16[128,36], index: 0, kind: input, shape index: {}]   ;;  %s573_s1 = inlined_call_operand.vmem [shape: bf16[36,16], index: 1, kind: input, shape index: {}]   ;;  %s574_s2 = inlined_call_operand.vmem [shape: f32[1,16], index: 2, kind: input, shape index: {}]   ;;  %s575_s3 = inlined_call_operand.vmem [shape: bf16[128,16], index: 3, kind: output, shape index: {}]  }
   0x1 LB: > { %s417_s13 = sadd.s32 4294967295, %s506_s12   ;;  %p421_p0 = scmp.ge.s32.totalorder %s506_s12, 1  ;;  %s506_s12 = sphi %s528_s12, %s13_s12  }
   0x2   : > { %p138_p1 = scmp.lt.s32.totalorder %s506_s12, 3 }
   0x4   : > { %p139_p2 = pnand %p421_p0, %p138_p1 }
   0x5   : > { %v493_v0 = vld [vmem:[%s573_s1] sm:$0xff] (!%p139_p2)   ;;  %v494_v1 = vld [vmem:[%s573_s1 + $0x8] sm:$0xff] (!%p139_p2)   ;;  %s422_s18 = sshll.u32 (!%p139_p2), %s417_s13, 3  ;;  %v495_v2 = vld [vmem:[%s573_s1 + $0x10] ss:$0 sps:$4 sm:$0x33] (!%p139_p2)  }
   0x6   : > { %142 = sbr.rel (%p139_p2) target bundleno = 240 (0xf0), region = 32  ;;  %463 = vmatprep.subr.bf16.mxu0 (!%p139_p2), %v493_v0  ;;  %477 = vmatprep.subr.bf16.mxu1 (!%p139_p2), %v493_v0  ;;  %p163_p3 = scmp.lt.s32.totalorder (!%p139_p2), %s422_s18, 15  ;;  %vm243_vm0 = vcmask (!%p139_p2), 1041408   ;;  %vm230_vm1 = vcmask (!%p139_p2), 293888   ;;  %v426_v8 = vld [vmem:[%s574_s2] ss:$0 sm:$0xff] (!%p139_p2) }
   0x7   : > { %464 = vmatpush3.bf16.msra.mxu0 (!%p139_p2), %v493_v0  ;;  %480 = vmatpush3.bf16.msra.mxu1 (!%p139_p2), %v493_v0  ;;  %v245_v3 = vsel (!%p139_p2), %vm243_vm0, %v495_v2, 0  ;;  %vm352_vm2 = vcmask (!%p139_p2), 125952  }
   0x8   : > { %465 = vmatprep.subr.bf16.mxu0 (!%p139_p2), %v494_v1  ;;  %478 = vmatprep.subr.bf16.mxu1 (!%p139_p2), %v494_v1 }
   0xb   : > { %466 = vmatpush3.bf16.msra.mxu0 (!%p139_p2), %v494_v1  ;;  %481 = vmatpush3.bf16.msra.mxu1 (!%p139_p2), %v494_v1 }
   0xc   : > { %483 = vmatprep.subr.msk.bf16.mxu0 (!%p139_p2), %vm243_vm0, %v495_v2  ;;  %484 = vmatprep.subr.msk.bf16.mxu1 (!%p139_p2), %vm243_vm0, %v495_v2 }
   0xd   : > { %s577_s18 = smov (!%p163_p3, %s422_s18), 15 }
   0xe   : > { %s423_s21 = sshll.u32 %s577_s18, 2 }
   0xf   : > { %s166_s24 = scalar_lea.vmem %s572_s0, %s423_s21  ;;  %468 = vmatpush3.bf16.msra.mxu0 %v245_v3  ;;  %482 = vmatpush3.bf16.msra.mxu1 %v245_v3  ;;  %s172_s29 = scalar_lea.vmem %s575_s3, %s423_s21 }
  0x10   : > { %v496_v4 = vld [vmem:[%s166_s24] sm:$0xff]   ;;  %v497_v5 = vld [vmem:[%s166_s24 + $0x10] sm:$0xff]   ;;  %v498_v6 = vld [vmem:[%s166_s24 + $0x8] sm:$0xff]  }
  0x11   : > { %469 = vmatprep.mubr.msk.bf16.mxu0 %vm230_vm1, %v496_v4  ;;  %v499_v7 = vld [vmem:[%s166_s24 + $0x18] sm:$0xff]   ;;  %473 = vmatprep.mubr.msk.bf16.mxu1 %vm230_vm1, %v497_v5 }
  0x12   : > { %470 = vmatmul.mubr.msk.bf16.vlgmr.msra.gmra.mrb[0].mxu0 %vm230_vm1, %v498_v6  ;;  %474 = vmatmul.mubr.msk.bf16.vlgmr.msra.gmra.mrb[0].mxu1 %vm230_vm1, %v499_v7 }
  0xe5   : > { %v471_v9 = vpop.f32.mrb[0].mxu0  ;;  %v475_v10 = vpop.f32.mrb[0].mxu1 }
  0xe6   : > { %v290_v11 = vadd.f32 %v471_v9, %v426_v8  ;;  %v306_v12 = vadd.f32 %v475_v10, %v426_v8  ;;  %v281_v13 = vpop.f32.mrb[1].mxu0  ;;  %v297_v14 = vpop.f32.mrb[1].mxu1 }
  0xe7   : > { %v282_v15 = vadd.f32 %v426_v8, %v281_v13  ;;  %v298_v16 = vadd.f32 %v426_v8, %v297_v14  ;;  %v472_v17 = vpop.f32.mrb[2].mxu0  ;;  %v476_v18 = vpop.f32.mrb[2].mxu1 }
  0xe8   : > { %v314_v19 = vmax.f32 %v290_v11, 0.0  ;;  %v318_v20 = vmax.f32 %v306_v12, 0.0  ;;  %v293_v21 = vadd.f32 %v472_v17, %v426_v8  ;;  %v309_v22 = vadd.f32 %v476_v18, %v426_v8  ;;  %v284_v23 = vpop.f32.mrb[3].mxu0  ;;  %v300_v24 = vpop.f32.mrb[3].mxu1 }
  0xe9   : > { %v312_v25 = vmax.f32 %v282_v15, 0.0  ;;  %v316_v26 = vmax.f32 %v298_v16, 0.0  ;;  %v285_v27 = vadd.f32 %v426_v8, %v284_v23  ;;  %v301_v28 = vadd.f32 %v426_v8, %v300_v24 }
  0xea   : > { %v450_v29 = vpack.c.bf16 %v314_v19, %v314_v19  ;;  %v454_v30 = vpack.c.bf16 %v318_v20, %v318_v20  ;;  %v315_v31 = vmax.f32 %v293_v21, 0.0  ;;  %v319_v32 = vmax.f32 %v309_v22, 0.0 }
  0xeb   : > { %v448_v33 = vpack.c.bf16 %v312_v25, %v312_v25  ;;  %v452_v34 = vpack.c.bf16 %v316_v26, %v316_v26  ;;  %v313_v35 = vmax.f32 %v285_v27, 0.0  ;;  %v317_v36 = vmax.f32 %v301_v28, 0.0 }
  0xec   : > { %355 = vst.msk [vmem:[%s172_s29 + $0x8] sm:$0xf] %vm352_vm2, %v450_v29  ;;  %359 = vst.msk [vmem:[%s172_s29 + $0x18] sm:$0xf] %vm352_vm2, %v454_v30  ;;  %v451_v37 = vpack.c.bf16 %v315_v31, %v315_v31  ;;  %v455_v38 = vpack.c.bf16 %v319_v32, %v319_v32 }
  0xed   : > { %353 = vst.msk [vmem:[%s172_s29] sm:$0xf] %vm352_vm2, %v448_v33  ;;  %357 = vst.msk [vmem:[%s172_s29 + $0x10] sm:$0xf] %vm352_vm2, %v452_v34  ;;  %v449_v39 = vpack.c.bf16 %v313_v35, %v313_v35  ;;  %v453_v40 = vpack.c.bf16 %v317_v36, %v317_v36 }
  0xee   : > { %356 = vst.msk [vmem:[%s172_s29 + $0xc] sm:$0xf] %vm352_vm2, %v451_v37  ;;  %360 = vst.msk [vmem:[%s172_s29 + $0x1c] sm:$0xf] %vm352_vm2, %v455_v38 }
  0xef   : > { %354 = vst.msk [vmem:[%s172_s29 + $0x4] sm:$0xf] %vm352_vm2, %v449_v39  ;;  %358 = vst.msk [vmem:[%s172_s29 + $0x14] sm:$0xf] %vm352_vm2, %v453_v40 }
  0xf0 PF: > { %s13_s12 = sadd.s32 1, %s506_s12  }
  0xf1   : > { %p10_p4 = scmp.ge.s32.totalorder %s13_s12, 4  }
  0xf3   :  { %12 = sbr.rel (!%p10_p4) target bundleno = 1 (0x1), region = 62 }

// kernel: evflownet_forward.22
= control target key start
LH: loop header
LB: loop body
LE: loop exit
PB: predicated region body
PF: predicated region fallthrough
CT: control target
= control target key end

     0   :  { %s448_s12 = smov 0   ;;  %s498_s0 = inlined_call_operand.vmem [shape: bf16[32,144], index: 0, kind: input, shape index: {}]   ;;  %s499_s1 = inlined_call_operand.vmem [shape: bf16[144,48], index: 1, kind: input, shape index: {}]   ;;  %s500_s2 = inlined_call_operand.vmem [shape: f32[1,48], index: 2, kind: input, shape index: {}]   ;;  %s501_s3 = inlined_call_operand.vmem [shape: f32[32,48], index: 3, kind: output, shape index: {}]  }
   0x1 LB: > { %s372_s13 = sadd.s32 4294967295, %s425_s12   ;;  %p376_p0 = scmp.ge.s32.totalorder %s425_s12, 1  ;;  %s425_s12 = sphi %s448_s12, %s13_s12  }
   0x2   : > { %p139_p1 = scmp.lt.s32.totalorder %s425_s12, 3 }
   0x4   : > { %p140_p2 = pnand %p376_p0, %p139_p1 }
   0x5   : > { %v407_v0 = vld [vmem:[%s499_s1] sm:$0xff] (!%p140_p2)   ;;  %v427_v1 = vmov (!%p140_p2), 0   ;;  %s377_s16 = sshll.u32 (!%p140_p2), %s372_s13, 1  ;;  %v408_v2 = vld [vmem:[%s499_s1 + $0x8] sm:$0xff] (!%p140_p2)   ;;  %v409_v3 = vld [vmem:[%s499_s1 + $0x10] sm:$0xff] (!%p140_p2)   ;;  %vm268_vm0 = vcmask (!%p140_p2), 130048  }
   0x6   : > { %143 = sbr.rel (%p140_p2) target bundleno = 259 (0x103), region = 32  ;;  %272 = vmatprep.subr.bf16.mxu0 (!%p140_p2), %v427_v1  ;;  %p165_p3 = scmp.lt.s32.totalorder (!%p140_p2), %s377_s16, 3  ;;  %v410_v4 = vld [vmem:[%s499_s1 + $0x18] sm:$0xff] (!%p140_p2)   ;;  %v411_v6 = vld [vmem:[%s499_s1 + $0x20] sm:$0xff] (!%p140_p2)   ;;  %v412_v7 = vld [vmem:[%s499_s1 + $0x28] sm:$0xff] (!%p140_p2)   ;;  %vm313_vm1 = vcmask (!%p140_p2), 392192  }
   0x7   : > { %273 = vmatpush1.bf16.msra.mxu0 (!%p140_p2), %v407_v0  ;;  %v413_v8 = vld [vmem:[%s499_s1 + $0x30] sm:$0xff] (!%p140_p2)   ;;  %v414_v9 = vld [vmem:[%s499_s1 + $0x38] sm:$0xff] (!%p140_p2)   ;;  %v415_v10 = vld [vmem:[%s499_s1 + $0x40] sm:$0xff] (!%p140_p2)  }
   0x8   : > { %274 = vmatprep.subr.bf16.mxu0 (!%p140_p2), %v427_v1  ;;  %v382_v12 = vld [vmem:[%s500_s2] ss:$0 sm:$0xff] (!%p140_p2) }
   0xb   : > { %275 = vmatpush1.bf16.msra.mxu0 (!%p140_p2), %v408_v2 }
   0xc   : > { %276 = vmatprep.subr.bf16.mxu0 (!%p140_p2), %v427_v1 }
   0xd   : > { %s503_s16 = smov (!%p165_p3, %s377_s16), 3 }
   0xe   : > { %s397_s21 = sshll.u32 %s503_s16, 3 }
   0xf   : > { %s169_s24 = scalar_lea.vmem %s498_s0, %s397_s21  ;;  %277 = vmatpush1.bf16.msra.mxu0 %v409_v3  ;;  %s175_s15 = scalar_lea.vmem %s501_s3, %s397_s21 }
  0x10   : > { %v418_v5 = vld [vmem:[%s169_s24 + $0x4] ss:$8 sps:$4 sm:$0xff]   ;;  %278 = vmatprep.subr.bf16.mxu0 %v427_v1  ;;  %v416_v11 = vld [vmem:[%s169_s24] ss:$8 sps:$4 sm:$0xff]  }
  0x11   : > { %394 = vmatprep.mubr.msk.bf16.mxu0 %vm268_vm0, %v418_v5 }
  0x13   : > { %279 = vmatpush1.bf16.msra.mxu0 %v410_v4 }
  0x14   : > { %280 = vmatprep.subr.bf16.mxu0 %v427_v1 }
  0x17   : > { %281 = vmatpush1.bf16.msra.mxu0 %v411_v6 }
  0x18   : > { %282 = vmatprep.subr.bf16.mxu0 %v427_v1 }
  0x1b   : > { %283 = vmatpush1.bf16.msra.mxu0 %v412_v7 }
  0x1c   : > { %284 = vmatprep.subr.bf16.mxu0 %v427_v1 }
  0x1f   : > { %285 = vmatpush1.bf16.msra.mxu0 %v413_v8 }
  0x20   : > { %286 = vmatprep.subr.bf16.mxu0 %v427_v1 }
  0x23   : > { %287 = vmatpush1.bf16.msra.mxu0 %v414_v9 }
  0x24   : > { %288 = vmatprep.subr.bf16.mxu0 %v427_v1 }
  0x27   : > { %289 = vmatpush1.bf16.msra.mxu0 %v415_v10 }
  0x2a   : > { %305 = vmatmul.mubr.bf16.vlgmr.msra.gmra.mrb[0].mxu0 %v416_v11 }
  0xfd   : > { %v306_v13 = vpop.f32.mrb[0].mxu0 }
  0xfe   : > { %v307_v14 = vadd.f32 %v382_v12, %v306_v13  ;;  %v308_v15 = vpop.f32.mrb[1].mxu0 }
  0xff   : > { %v309_v16 = vpop.f32.mrb[2].mxu0 }
 0x100   : > { %314 = vst.msk [vmem:[%s175_s15] sm:$0xff] %vm313_vm1, %v307_v14  ;;  %v310_v17 = vadd.f32 %v382_v12, %v309_v16  ;;  %v311_v18 = vpop.f32.mrb[3].mxu0 }
 0x102   : > { %315 = vst.msk [vmem:[%s175_s15 + $0x8] sm:$0xff] %vm313_vm1, %v310_v17 }
 0x103 PF: > { %s13_s12 = sadd.s32 1, %s425_s12  }
 0x104   : > { %p10_p4 = scmp.ge.s32.totalorder %s13_s12, 4  }
 0x106   :  { %12 = sbr.rel (!%p10_p4) target bundleno = 1 (0x1), region = 62 }

// kernel: evflownet_forward.25
= control target key start
LH: loop header
LB: loop body
LE: loop exit
PB: predicated region body
PF: predicated region fallthrough
CT: control target
= control target key end

     0   :  { %s498_s12 = smov 0   ;;  %s571_s0 = inlined_call_operand.vmem [shape: bf16[32,216], index: 0, kind: input, shape index: {}]   ;;  %s572_s1 = inlined_call_operand.vmem [shape: bf16[216,72], index: 1, kind: input, shape index: {}]   ;;  %s573_s2 = inlined_call_operand.vmem [shape: f32[1,72], index: 2, kind: input, shape index: {}]   ;;  %s574_s3 = inlined_call_operand.vmem [shape: f32[32,72], index: 3, kind: output, shape index: {}]  }
   0x1 LB: > { %s412_s13 = sadd.s32 4294967295, %s475_s12   ;;  %p416_p0 = scmp.ge.s32.totalorder %s475_s12, 1  ;;  %s475_s12 = sphi %s498_s12, %s13_s12  }
   0x2   : > { %p139_p1 = scmp.lt.s32.totalorder %s475_s12, 3 }
   0x4   : > { %p140_p2 = pnand %p416_p0, %p139_p1 }
   0x5   : > { %v452_v0 = vld [vmem:[%s572_s1] sm:$0xff] (!%p140_p2)   ;;  %v477_v1 = vmov (!%p140_p2), 0   ;;  %v453_v2 = vld [vmem:[%s572_s1 + $0x8] sm:$0xff] (!%p140_p2)   ;;  %s417_s18 = sshll.u32 (!%p140_p2), %s412_s13, 1  ;;  %v454_v3 = vld [vmem:[%s572_s1 + $0x10] sm:$0xff] (!%p140_p2)   ;;  %vm304_vm0 = vcmask (!%p140_p2), 719872  }
   0x6   : > { %143 = sbr.rel (%p140_p2) target bundleno = 279 (0x117), region = 32  ;;  %312 = vmatprep.subr.bf16.mxu0 (!%p140_p2), %v477_v1  ;;  %p165_p3 = scmp.lt.s32.totalorder (!%p140_p2), %s417_s18, 3  ;;  %v455_v4 = vld [vmem:[%s572_s1 + $0x18] sm:$0xff] (!%p140_p2)   ;;  %v456_v5 = vld [vmem:[%s572_s1 + $0x20] sm:$0xff] (!%p140_p2)   ;;  %v457_v7 = vld [vmem:[%s572_s1 + $0x28] sm:$0xff] (!%p140_p2)   ;;  %vm308_vm1 = vcmask (!%p140_p2), 1043456  }
   0x7   : > { %313 = vmatpush1.bf16.msra.mxu0 (!%p140_p2), %v452_v0  ;;  %v458_v8 = vld [vmem:[%s572_s1 + $0x30] sm:$0xff] (!%p140_p2)   ;;  %v459_v9 = vld [vmem:[%s572_s1 + $0x38] sm:$0xff] (!%p140_p2)   ;;  %v460_v10 = vld [vmem:[%s572_s1 + $0x40] sm:$0xff] (!%p140_p2)   ;;  %vm353_vm2 = vcmask (!%p140_p2), 588800  }
   0x8   : > { %314 = vmatprep.subr.bf16.mxu0 (!%p140_p2), %v477_v1  ;;  %v461_v11 = vld [vmem:[%s572_s1 + $0x48] sm:$0xff] (!%p140_p2)   ;;  %v462_v12 = vld [vmem:[%s572_s1 + $0x50] sm:$0xff] (!%p140_p2)   ;;  %v463_v13 = vld [vmem:[%s572_s1 + $0x58] sm:$0xff] (!%p140_p2)  }
   0x9   : > { %v464_v14 = vld [vmem:[%s572_s1 + $0x60] sm:$0xff] (!%p140_p2)   ;;  %v465_v15 = vld [vmem:[%s572_s1 + $0x68] ss:$0 sps:$4 sm:$0xff] (!%p140_p2)  }
   0xa   : > { %v310_v16 = vsel (!%p140_p2), %vm308_vm1, %v465_v15, 0  ;;  %v422_v18 = vld [vmem:[%s573_s2] ss:$0 sm:$0xff] (!%p140_p2) }
   0xb   : > { %315 = vmatpush1.bf16.msra.mxu0 (!%p140_p2), %v453_v2 }
   0xc   : > { %316 = vmatprep.subr.bf16.mxu0 (!%p140_p2), %v477_v1 }
   0xd   : > { %s576_s18 = smov (!%p165_p3, %s417_s18), 3 }
   0xe   : > { %s442_s21 = sshll.u32 %s576_s18, 3 }
   0xf   : > { %317 = vmatpush1.bf16.msra.mxu0 %v454_v3  ;;  %s526_s26 = scalar_lea.vmem %s571_s0, %s442_s21  ;;  %s175_s28 = scalar_lea.vmem %s574_s3, %s442_s21 }
  0x10   : > { %318 = vmatprep.subr.bf16.mxu0 %v477_v1  ;;  %v468_v6 = vld [vmem:[%s526_s26 + $0x4] ss:$8 sps:$4 sm:$0xff]   ;;  %v466_v17 = vld [vmem:[%s526_s26] ss:$8 sps:$4 sm:$0xff]  }
  0x11   : > { %439 = vmatprep.mubr.msk.bf16.mxu0 %vm304_vm0, %v468_v6 }
  0x13   : > { %319 = vmatpush1.bf16.msra.mxu0 %v455_v4 }
  0x14   : > { %320 = vmatprep.subr.bf16.mxu0 %v477_v1 }
  0x17   : > { %321 = vmatpush1.bf16.msra.mxu0 %v456_v5 }
  0x18   : > { %322 = vmatprep.subr.bf16.mxu0 %v477_v1 }
  0x1b   : > { %323 = vmatpush1.bf16.msra.mxu0 %v457_v7 }
  0x1c   : > { %324 = vmatprep.subr.bf16.mxu0 %v477_v1 }
  0x1f   : > { %325 = vmatpush1.bf16.msra.mxu0 %v458_v8 }
  0x20   : > { %326 = vmatprep.subr.bf16.mxu0 %v477_v1 }
  0x23   : > { %327 = vmatpush1.bf16.msra.mxu0 %v459_v9 }
  0x24   : > { %328 = vmatprep.subr.bf16.mxu0 %v477_v1 }
  0x27   : > { %329 = vmatpush1.bf16.msra.mxu0 %v460_v10 }
  0x28   : > { %330 = vmatprep.subr.bf16.mxu0 %v477_v1 }
  0x2b   : > { %331 = vmatpush1.bf16.msra.mxu0 %v461_v11 }
  0x2c   : > { %332 = vmatprep.subr.bf16.mxu0 %v477_v1 }
  0x2f   : > { %333 = vmatpush1.bf16.msra.mxu0 %v462_v12 }
  0x30   : > { %334 = vmatprep.subr.bf16.mxu0 %v477_v1 }
  0x33   : > { %335 = vmatpush1.bf16.msra.mxu0 %v463_v13 }
  0x34   : > { %336 = vmatprep.subr.bf16.mxu0 %v477_v1 }
  0x37   : > { %337 = vmatpush1.bf16.msra.mxu0 %v464_v14 }
  0x38   : > { %338 = vmatprep.subr.bf16.mxu0 %v477_v1 }
  0x3b   : > { %339 = vmatpush1.bf16.msra.mxu0 %v310_v16 }
  0x3e   : > { %345 = vmatmul.mubr.bf16.vlgmr.msra.gmra.mrb[0].mxu0 %v466_v17 }
 0x111   : > { %v346_v19 = vpop.f32.mrb[0].mxu0 }
 0x112   : > { %v347_v20 = vadd.f32 %v422_v18, %v346_v19  ;;  %v348_v21 = vpop.f32.mrb[1].mxu0 }
 0x113   : > { %v349_v22 = vpop.f32.mrb[2].mxu0 }
 0x114   : > { %354 = vst.msk [vmem:[%s175_s28] sm:$0xff] %vm353_vm2, %v347_v20  ;;  %v350_v23 = vadd.f32 %v422_v18, %v349_v22  ;;  %v351_v24 = vpop.f32.mrb[3].mxu0 }
 0x116   : > { %355 = vst.msk [vmem:[%s175_s28 + $0x8] sm:$0xff] %vm353_vm2, %v350_v23 }
 0x117 PF: > { %s13_s12 = sadd.s32 1, %s475_s12  }
 0x118   : > { %p10_p4 = scmp.ge.s32.totalorder %s13_s12, 4  }
 0x11a   :  { %12 = sbr.rel (!%p10_p4) target bundleno = 1 (0x1), region = 62 }

// kernel: evflownet_forward.19
= control target key start
LH: loop header
LB: loop body
LE: loop exit
PB: predicated region body
PF: predicated region fallthrough
CT: control target
= control target key end

     0   :  { %s673_s12 = smov 0   ;;  %s766_s0 = inlined_call_operand.vmem [shape: bf16[256,18], index: 0, kind: input, shape index: {}]   ;;  %s767_s1 = inlined_call_operand.vmem [shape: bf16[18,16], index: 1, kind: input, shape index: {}]   ;;  %s768_s2 = inlined_call_operand.vmem [shape: f32[1,16], index: 2, kind: input, shape index: {}]   ;;  %s769_s3 = inlined_call_operand.vmem [shape: bf16[256,16], index: 3, kind: output, shape index: {}]  }
   0x1 LB: > { %s529_s13 = sadd.s32 4294967295, %s651_s12   ;;  %p533_p0 = scmp.ge.s32.totalorder %s651_s12, 1  ;;  %s651_s12 = sphi %s673_s12, %s13_s12  }
   0x2   : > { %p138_p1 = scmp.lt.s32.totalorder %s651_s12, 3 }
   0x4   : > { %p139_p2 = pnand %p533_p0, %p138_p1 }
   0x5   : > { %v635_v0 = vld [vmem:[%s767_s1] sm:$0xff] (!%p139_p2)   ;;  %vm275_vm0 = vcmask (!%p139_p2), 1040384   ;;  %v636_v1 = vld [vmem:[%s767_s1 + $0x8] ss:$0 sps:$4 sm:$0x11] (!%p139_p2)   ;;  %s534_s18 = sshll.u32 (!%p139_p2), %s529_s13, 4 }
   0x6   : > { %142 = sbr.rel (%p139_p2) target bundleno = 249 (0xf9), region = 32  ;;  %601 = vmatprep.subr.bf16.mxu0 (!%p139_p2), %v635_v0  ;;  %621 = vmatprep.subr.bf16.mxu1 (!%p139_p2), %v635_v0  ;;  %p163_p3 = scmp.lt.s32.totalorder (!%p139_p2), %s534_s18, 31  ;;  %v277_v2 = vsel (!%p139_p2), %vm275_vm0, %v636_v1, 0  ;;  %vm250_vm1 = vcmask (!%p139_p2), 146432   ;;  %v706_v11 = vld [vmem:[%s768_s2] ss:$0 sm:$0xff] (!%p139_p2) }
   0x7   : > { %602 = vmatpush3.bf16.msra.mxu0 (!%p139_p2), %v635_v0  ;;  %623 = vmatpush3.bf16.msra.mxu1 (!%p139_p2), %v635_v0  ;;  %vm456_vm2 = vcmask (!%p139_p2), 125952  }
   0x8   : > { %625 = vmatprep.subr.msk.bf16.mxu0 (!%p139_p2), %vm275_vm0, %v636_v1  ;;  %626 = vmatprep.subr.msk.bf16.mxu1 (!%p139_p2), %vm275_vm0, %v636_v1 }
   0xb   : > { %604 = vmatpush3.bf16.msra.mxu0 (!%p139_p2), %v277_v2  ;;  %624 = vmatpush3.bf16.msra.mxu1 (!%p139_p2), %v277_v2 }
   0xd   : > { %s771_s18 = smov (!%p163_p3, %s534_s18), 31 }
   0xe   : > { %s535_s19 = sshll.u32 %s771_s18, 2 }
   0xf   : > { %s166_s22 = scalar_lea.vmem %s766_s0, %s535_s19  ;;  %s718_s27 = scalar_lea.vmem %s769_s3, %s535_s19 }
  0x10   : > { %v637_v3 = vld [vmem:[%s166_s22] sm:$0xff]   ;;  %v639_v5 = vld [vmem:[%s166_s22 + $0x8] sm:$0xff]   ;;  %v641_v7 = vld [vmem:[%s166_s22 + $0x10] sm:$0xff]  }
  0x11   : > { %v638_v4 = vld [vmem:[%s166_s22 + $0x20] sm:$0xff]   ;;  %605 = vmatprep.mubr.msk.bf16.mxu0 %vm250_vm1, %v637_v3  ;;  %v640_v6 = vld [vmem:[%s166_s22 + $0x28] sm:$0xff]   ;;  %v642_v8 = vld [vmem:[%s166_s22 + $0x30] sm:$0xff]  }
  0x12   : > { %613 = vmatprep.mubr.msk.bf16.mxu1 %vm250_vm1, %v638_v4  ;;  %606 = vmatmul.mubr.msk.bf16.vlgmr.msra.gmra.mrb[0].mxu0 %vm250_vm1, %v639_v5  ;;  %v643_v9 = vld [vmem:[%s166_s22 + $0x18] sm:$0xff]  }
  0x13   : > { %614 = vmatmul.mubr.msk.bf16.vlgmr.msra.gmra.mrb[0].mxu1 %vm250_vm1, %v640_v6  ;;  %609 = vmatprep.mubr.msk.bf16.mxu0 %vm250_vm1, %v641_v7  ;;  %v644_v10 = vld [vmem:[%s166_s22 + $0x38] sm:$0xff]  }
  0x14   : > { %617 = vmatprep.mubr.msk.bf16.mxu1 %vm250_vm1, %v642_v8 }
  0x1a   : > { %610 = vmatmul.mubr.msk.bf16.gmra.mrb[4].mxu0 %vm250_vm1, %v643_v9 }
  0x1b   : > { %618 = vmatmul.mubr.msk.bf16.gmra.mrb[4].mxu1 %vm250_vm1, %v644_v10 }
  0xe5   : > { %v607_v12 = vpop.f32.mrb[0].mxu0 }
  0xe6   : > { %v322_v13 = vadd.f32 %v607_v12, %v706_v11  ;;  %v615_v14 = vpop.f32.mrb[0].mxu1  ;;  %v313_v15 = vpop.f32.mrb[1].mxu0 }
  0xe7   : > { %v354_v16 = vadd.f32 %v615_v14, %v706_v11  ;;  %v314_v17 = vadd.f32 %v706_v11, %v313_v15  ;;  %v345_v18 = vpop.f32.mrb[1].mxu1  ;;  %v608_v19 = vpop.f32.mrb[2].mxu0 }
  0xe8   : > { %v378_v20 = vmax.f32 %v322_v13, 0.0  ;;  %v346_v21 = vadd.f32 %v706_v11, %v345_v18  ;;  %v325_v22 = vadd.f32 %v608_v19, %v706_v11  ;;  %v616_v23 = vpop.f32.mrb[2].mxu1  ;;  %v316_v24 = vpop.f32.mrb[3].mxu0 }
  0xe9   : > { %v386_v25 = vmax.f32 %v354_v16, 0.0  ;;  %v376_v26 = vmax.f32 %v314_v17, 0.0  ;;  %v357_v27 = vadd.f32 %v616_v23, %v706_v11  ;;  %v317_v28 = vadd.f32 %v706_v11, %v316_v24  ;;  %v348_v29 = vpop.f32.mrb[3].mxu1 }
  0xea   : > { %v577_v30 = vpack.c.bf16 %v378_v20, %v378_v20  ;;  %v384_v31 = vmax.f32 %v346_v21, 0.0  ;;  %v379_v32 = vmax.f32 %v325_v22, 0.0  ;;  %v349_v33 = vadd.f32 %v706_v11, %v348_v29 }
  0xeb   : > { %v585_v34 = vpack.c.bf16 %v386_v25, %v386_v25  ;;  %v575_v35 = vpack.c.bf16 %v376_v26, %v376_v26  ;;  %v387_v36 = vmax.f32 %v357_v27, 0.0  ;;  %v377_v37 = vmax.f32 %v317_v28, 0.0 }
  0xec   : > { %459 = vst.msk [vmem:[%s718_s27 + $0x8] sm:$0xf] %vm456_vm2, %v577_v30  ;;  %v583_v38 = vpack.c.bf16 %v384_v31, %v384_v31  ;;  %v578_v39 = vpack.c.bf16 %v379_v32, %v379_v32  ;;  %v385_v40 = vmax.f32 %v349_v33, 0.0 }
  0xed   : > { %467 = vst.msk [vmem:[%s718_s27 + $0x28] sm:$0xf] %vm456_vm2, %v585_v34  ;;  %457 = vst.msk [vmem:[%s718_s27] sm:$0xf] %vm456_vm2, %v575_v35  ;;  %v586_v41 = vpack.c.bf16 %v387_v36, %v387_v36  ;;  %v576_v42 = vpack.c.bf16 %v377_v37, %v377_v37  ;;  %v611_v43 = vpop.f32.mrb[4].mxu0 }
  0xee   : > { %465 = vst.msk [vmem:[%s718_s27 + $0x20] sm:$0xf] %vm456_vm2, %v583_v38  ;;  %460 = vst.msk [vmem:[%s718_s27 + $0xc] sm:$0xf] %vm456_vm2, %v578_v39  ;;  %v584_v44 = vpack.c.bf16 %v385_v40, %v385_v40  ;;  %v338_v45 = vadd.f32 %v611_v43, %v706_v11  ;;  %v619_v46 = vpop.f32.mrb[4].mxu1  ;;  %v329_v47 = vpop.f32.mrb[5].mxu0 }
  0xef   : > { %468 = vst.msk [vmem:[%s718_s27 + $0x2c] sm:$0xf] %vm456_vm2, %v586_v41  ;;  %458 = vst.msk [vmem:[%s718_s27 + $0x4] sm:$0xf] %vm456_vm2, %v576_v42  ;;  %v370_v48 = vadd.f32 %v619_v46, %v706_v11  ;;  %v330_v49 = vadd.f32 %v706_v11, %v329_v47  ;;  %v361_v50 = vpop.f32.mrb[5].mxu1  ;;  %v612_v51 = vpop.f32.mrb[6].mxu0 }
  0xf0   : > { %466 = vst.msk [vmem:[%s718_s27 + $0x24] sm:$0xf] %vm456_vm2, %v584_v44  ;;  %v382_v52 = vmax.f32 %v338_v45, 0.0  ;;  %v362_v53 = vadd.f32 %v706_v11, %v361_v50  ;;  %v341_v54 = vadd.f32 %v612_v51, %v706_v11  ;;  %v620_v55 = vpop.f32.mrb[6].mxu1  ;;  %v332_v56 = vpop.f32.mrb[7].mxu0 }
  0xf1   : > { %v390_v57 = vmax.f32 %v370_v48, 0.0  ;;  %v380_v58 = vmax.f32 %v330_v49, 0.0  ;;  %v373_v59 = vadd.f32 %v620_v55, %v706_v11  ;;  %v333_v60 = vadd.f32 %v706_v11, %v332_v56  ;;  %v364_v61 = vpop.f32.mrb[7].mxu1 }
  0xf2   : > { %v581_v62 = vpack.c.bf16 %v382_v52, %v382_v52  ;;  %v388_v63 = vmax.f32 %v362_v53, 0.0  ;;  %v383_v0 = vmax.f32 %v341_v54, 0.0  ;;  %v365_v1 = vadd.f32 %v706_v11, %v364_v61 }
  0xf3   : > { %v589_v2 = vpack.c.bf16 %v390_v57, %v390_v57  ;;  %v579_v3 = vpack.c.bf16 %v380_v58, %v380_v58  ;;  %v391_v4 = vmax.f32 %v373_v59, 0.0  ;;  %v381_v5 = vmax.f32 %v333_v60, 0.0 }
  0xf4   : > { %463 = vst.msk [vmem:[%s718_s27 + $0x18] sm:$0xf] %vm456_vm2, %v581_v62  ;;  %v587_v6 = vpack.c.bf16 %v388_v63, %v388_v63  ;;  %v582_v7 = vpack.c.bf16 %v383_v0, %v383_v0  ;;  %v389_v8 = vmax.f32 %v365_v1, 0.0 }
  0xf5   : > { %471 = vst.msk [vmem:[%s718_s27 + $0x38] sm:$0xf] %vm456_vm2, %v589_v2  ;;  %461 = vst.msk [vmem:[%s718_s27 + $0x10] sm:$0xf] %vm456_vm2, %v579_v3  ;;  %v590_v9 = vpack.c.bf16 %v391_v4, %v391_v4  ;;  %v580_v10 = vpack.c.bf16 %v381_v5, %v381_v5 }
  0xf6   : > { %469 = vst.msk [vmem:[%s718_s27 + $0x30] sm:$0xf] %vm456_vm2, %v587_v6  ;;  %464 = vst.msk [vmem:[%s718_s27 + $0x1c] sm:$0xf] %vm456_vm2, %v582_v7  ;;  %v588_v11 = vpack.c.bf16 %v389_v8, %v389_v8 }
  0xf7   : > { %472 = vst.msk [vmem:[%s718_s27 + $0x3c] sm:$0xf] %vm456_vm2, %v590_v9  ;;  %462 = vst.msk [vmem:[%s718_s27 + $0x14] sm:$0xf] %vm456_vm2, %v580_v10 }
  0xf8   : > { %470 = vst.msk [vmem:[%s718_s27 + $0x34] sm:$0xf] %vm456_vm2, %v588_v11 }
  0xf9 PF: > { %s13_s12 = sadd.s32 1, %s651_s12  }
  0xfa   : > { %p10_p4 = scmp.ge.s32.totalorder %s13_s12, 4  }
  0xfc   :  { %12 = sbr.rel (!%p10_p4) target bundleno = 1 (0x1), region = 62 }

// kernel: evflownet_forward.20
= control target key start
LH: loop header
LB: loop body
LE: loop exit
PB: predicated region body
PF: predicated region fallthrough
CT: control target
= control target key end

     0   :  { %s524_s12 = smov 0   ;;  %s581_s0 = inlined_call_operand.vmem [shape: bf16[64,144], index: 0, kind: input, shape index: {}]   ;;  %s582_s1 = inlined_call_operand.vmem [shape: bf16[144,32], index: 1, kind: input, shape index: {}]   ;;  %s583_s2 = inlined_call_operand.vmem [shape: f32[1,32], index: 2, kind: input, shape index: {}]   ;;  %s584_s3 = inlined_call_operand.vmem [shape: bf16[64,32], index: 3, kind: output, shape index: {}]  }
   0x1 LB: > { %s416_s13 = sadd.s32 4294967295, %s501_s12   ;;  %p420_p0 = scmp.ge.s32.totalorder %s501_s12, 1  ;;  %s501_s12 = sphi %s524_s12, %s13_s12  }
   0x2   : > { %p139_p1 = scmp.lt.s32.totalorder %s501_s12, 3 }
   0x4   : > { %p140_p2 = pnand %p420_p0, %p139_p1 }
   0x5   : > { %v480_v0 = vld [vmem:[%s582_s1] sm:$0xff] (!%p140_p2)   ;;  %v503_v1 = vmov (!%p140_p2), 0   ;;  %s421_s16 = sshll.u32 (!%p140_p2), %s416_s13, 2  ;;  %v481_v2 = vld [vmem:[%s582_s1 + $0x8] sm:$0xff] (!%p140_p2)   ;;  %v482_v3 = vld [vmem:[%s582_s1 + $0x10] sm:$0xff] (!%p140_p2)   ;;  %vm279_vm0 = vcmask (!%p140_p2), 130048  }
   0x6   : > { %143 = sbr.rel (%p140_p2) target bundleno = 263 (0x107), region = 32  ;;  %286 = vmatprep.subr.bf16.mxu0 (!%p140_p2), %v503_v1  ;;  %453 = vmatprep.subr.bf16.mxu1 (!%p140_p2), %v503_v1  ;;  %p165_p3 = scmp.lt.s32.totalorder (!%p140_p2), %s421_s16, 7  ;;  %v483_v4 = vld [vmem:[%s582_s1 + $0x18] sm:$0xff] (!%p140_p2)   ;;  %v484_v7 = vld [vmem:[%s582_s1 + $0x20] sm:$0xff] (!%p140_p2)   ;;  %v485_v8 = vld [vmem:[%s582_s1 + $0x28] sm:$0xff] (!%p140_p2)   ;;  %vm355_vm1 = vcmask (!%p140_p2), 257024  }
   0x7   : > { %287 = vmatpush1.bf16.msra.mxu0 (!%p140_p2), %v480_v0  ;;  %462 = vmatpush1.bf16.msra.mxu1 (!%p140_p2), %v480_v0  ;;  %v486_v9 = vld [vmem:[%s582_s1 + $0x30] sm:$0xff] (!%p140_p2)   ;;  %v487_v10 = vld [vmem:[%s582_s1 + $0x38] sm:$0xff] (!%p140_p2)   ;;  %v488_v11 = vld [vmem:[%s582_s1 + $0x40] sm:$0xff] (!%p140_p2)  }
   0x8   : > { %288 = vmatprep.subr.bf16.mxu0 (!%p140_p2), %v503_v1  ;;  %454 = vmatprep.subr.bf16.mxu1 (!%p140_p2), %v503_v1  ;;  %v426_v14 = vld [vmem:[%s583_s2] ss:$0 sm:$0xff] (!%p140_p2) }
   0xb   : > { %289 = vmatpush1.bf16.msra.mxu0 (!%p140_p2), %v481_v2  ;;  %463 = vmatpush1.bf16.msra.mxu1 (!%p140_p2), %v481_v2 }
   0xc   : > { %290 = vmatprep.subr.bf16.mxu0 (!%p140_p2), %v503_v1  ;;  %455 = vmatprep.subr.bf16.mxu1 (!%p140_p2), %v503_v1 }
   0xd   : > { %s586_s16 = smov (!%p165_p3, %s421_s16), 7 }
   0xe   : > { %s448_s21 = sshll.u32 %s586_s16, 3  ;;  %s425_s13 = sshll.u32 %s586_s16, 2 }
   0xf   : > { %s547_s24 = scalar_lea.vmem %s581_s0, %s448_s21  ;;  %291 = vmatpush1.bf16.msra.mxu0 %v482_v3  ;;  %464 = vmatpush1.bf16.msra.mxu1 %v482_v3  ;;  %s175_s17 = scalar_lea.vmem %s584_s3, %s425_s13 }
  0x10   : > { %v491_v5 = vld [vmem:[%s547_s24 + $0x4] ss:$8 sps:$4 sm:$0xff]   ;;  %292 = vmatprep.subr.bf16.mxu0 %v503_v1  ;;  %456 = vmatprep.subr.bf16.mxu1 %v503_v1  ;;  %v494_v6 = vld [vmem:[%s547_s24 + $0x14] ss:$8 sps:$4 sm:$0xff]   ;;  %v489_v12 = vld [vmem:[%s547_s24] ss:$8 sps:$4 sm:$0xff]  }
  0x11   : > { %440 = vmatprep.mubr.msk.bf16.mxu0 %vm279_vm0, %v491_v5  ;;  %441 = vmatprep.mubr.msk.bf16.mxu1 %vm279_vm0, %v494_v6  ;;  %v492_v13 = vld [vmem:[%s547_s24 + $0x10] ss:$8 sps:$4 sm:$0xff]  }
  0x13   : > { %293 = vmatpush1.bf16.msra.mxu0 %v483_v4  ;;  %465 = vmatpush1.bf16.msra.mxu1 %v483_v4 }
  0x14   : > { %294 = vmatprep.subr.bf16.mxu0 %v503_v1  ;;  %457 = vmatprep.subr.bf16.mxu1 %v503_v1 }
  0x17   : > { %295 = vmatpush1.bf16.msra.mxu0 %v484_v7  ;;  %466 = vmatpush1.bf16.msra.mxu1 %v484_v7 }
  0x18   : > { %296 = vmatprep.subr.bf16.mxu0 %v503_v1  ;;  %458 = vmatprep.subr.bf16.mxu1 %v503_v1 }
  0x1b   : > { %297 = vmatpush1.bf16.msra.mxu0 %v485_v8  ;;  %467 = vmatpush1.bf16.msra.mxu1 %v485_v8 }
  0x1c   : > { %298 = vmatprep.subr.bf16.mxu0 %v503_v1  ;;  %459 = vmatprep.subr.bf16.mxu1 %v503_v1 }
  0x1f   : > { %299 = vmatpush1.bf16.msra.mxu0 %v486_v9  ;;  %468 = vmatpush1.bf16.msra.mxu1 %v486_v9 }
  0x20   : > { %300 = vmatprep.subr.bf16.mxu0 %v503_v1  ;;  %460 = vmatprep.subr.bf16.mxu1 %v503_v1 }
  0x23   : > { %301 = vmatpush1.bf16.msra.mxu0 %v487_v10  ;;  %469 = vmatpush1.bf16.msra.mxu1 %v487_v10 }
  0x24   : > { %302 = vmatprep.subr.bf16.mxu0 %v503_v1  ;;  %461 = vmatprep.subr.bf16.mxu1 %v503_v1 }
  0x27   : > { %303 = vmatpush1.bf16.msra.mxu0 %v488_v11  ;;  %470 = vmatpush1.bf16.msra.mxu1 %v488_v11 }
  0x2a   : > { %319 = vmatmul.mubr.bf16.vlgmr.msra.gmra.mrb[0].mxu0 %v489_v12  ;;  %327 = vmatmul.mubr.bf16.vlgmr.msra.gmra.mrb[0].mxu1 %v492_v13 }
  0xfd   : > { %v320_v15 = vpop.f32.mrb[0].mxu0  ;;  %v328_v16 = vpop.f32.mrb[0].mxu1 }
  0xfe   : > { %v321_v17 = vadd.f32 %v426_v14, %v320_v15  ;;  %v329_v18 = vadd.f32 %v426_v14, %v328_v16  ;;  %v322_v19 = vpop.f32.mrb[1].mxu0  ;;  %v330_v20 = vpop.f32.mrb[1].mxu1 }
  0xff   : > { %v323_v21 = vpop.f32.mrb[2].mxu0  ;;  %v331_v22 = vpop.f32.mrb[2].mxu1 }
 0x100   : > { %v335_v23 = vmax.f32 %v321_v17, 0.0  ;;  %v337_v24 = vmax.f32 %v329_v18, 0.0  ;;  %v324_v25 = vadd.f32 %v426_v14, %v323_v21  ;;  %v332_v26 = vadd.f32 %v426_v14, %v331_v22  ;;  %v325_v27 = vpop.f32.mrb[3].mxu0  ;;  %v333_v28 = vpop.f32.mrb[3].mxu1 }
 0x102   : > { %v449_v29 = vpack.c.bf16 %v335_v23, %v335_v23  ;;  %v336_v30 = vmax.f32 %v324_v25, 0.0  ;;  %v338_v31 = vmax.f32 %v332_v26, 0.0  ;;  %v451_v32 = vpack.c.bf16 %v337_v24, %v337_v24 }
 0x104   : > { %356 = vst.msk [vmem:[%s175_s17] sm:$0xf] %vm355_vm1, %v449_v29  ;;  %v450_v33 = vpack.c.bf16 %v336_v30, %v336_v30  ;;  %v452_v34 = vpack.c.bf16 %v338_v31, %v338_v31  ;;  %358 = vst.msk [vmem:[%s175_s17 + $0x8] sm:$0xf] %vm355_vm1, %v451_v32 }
 0x106   : > { %357 = vst.msk [vmem:[%s175_s17 + $0x4] sm:$0xf] %vm355_vm1, %v450_v33  ;;  %359 = vst.msk [vmem:[%s175_s17 + $0xc] sm:$0xf] %vm355_vm1, %v452_v34 }
 0x107 PF: > { %s13_s12 = sadd.s32 1, %s501_s12  }
 0x108   : > { %p10_p4 = scmp.ge.s32.totalorder %s13_s12, 4  }
 0x10a   :  { %12 = sbr.rel (!%p10_p4) target bundleno = 1 (0x1), region = 62 }

// kernel: evflownet_forward.23
= control target key start
LH: loop header
LB: loop body
LE: loop exit
PB: predicated region body
PF: predicated region fallthrough
CT: control target
= control target key end

     0   :  { %s478_s9 = smov 0   ;;  %s480_s10 = smov 0   ;;  %s514_s0 = inlined_call_operand.vmem [shape: bf16[2,16,32], index: 0, kind: input, shape index: {}]   ;;  %s515_s1 = inlined_call_operand.vmem [shape: bf16[2,16,32], index: 1, kind: input, shape index: {}]   ;;  %s516_s2 = inlined_call_operand.vmem [shape: bf16[2,16,16], index: 2, kind: output, shape index: {}]  }
   0x1   :  { %s482_s11 = smov 0  }
   0x2 LB: > { %s24_s12 = sadd.s32 1, %s455_s10  ;;  %p382_p0 = scmp.ge.s32.totalorder %s459_s11, 1  ;;  %s459_s11 = sphi %s482_s11, %s12_s11   ;;  %s455_s10 = sphi %s480_s10, %s518_s10   ;;  %s451_s9 = sphi %s478_s9, %s517_s9  }
   0x3   : > { %p26_p1 = scmp.ge.s32.totalorder %s24_s12, 2  ;;  %p143_p2 = scmp.lt.s32.totalorder %s459_s11, 3 }
   0x5   : > { %s520_s12 = smov (%p26_p1, %s24_s12), 0  ;;  %p144_p3 = pnand %p382_p0, %p143_p2 }
   0x6   : > { %p179_p4 = scmp.lt.s32.totalorder (!%p144_p3), %s451_s9, 1  ;;  %v461_v0 = vmov (!%p144_p3), 0.0   ;;  %vm462_vm0 = vmmov (!%p144_p3), 0   ;;  %vm218_vm1 = vcmask (!%p144_p3), 261120   ;;  %vm276_vm2 = vcmask (!%p144_p3), 125952  }
   0x7   : > { %147 = sbr.rel (%p144_p3) target bundleno = 245 (0xf5), region = 28  ;;  %403 = vmatprep.subr.bf16.mxu0 (!%p144_p3), %v461_v0  ;;  %405 = vmatprep.mubr.msk.bf16.mxu0 (!%p144_p3), %vm462_vm0, %v461_v0 }
   0xe   : > { %s522_s9 = smov (!%p179_p4, %s451_s9), 1 }
   0xf   : > { %s396_s13 = sshll.u32 %s522_s9, 3 }
  0x10   : > { %s192_s16 = scalar_lea.vmem %s515_s1, %s396_s13  ;;  %s186_s19 = scalar_lea.vmem %s514_s0, %s396_s13 }
  0x11   : > { %v435_v1 = vld [vmem:[%s192_s16] sm:$0xff]   ;;  %s201_s22 = scalar_lea.vmem %s516_s2, %s396_s13 }
  0x12   : > { %v223_v2 = vsel %vm218_vm1, %v435_v1, 0  ;;  %v436_v3 = vld [vmem:[%s186_s19] sm:$0xff]  }
  0x13   : > { %404 = vmatpush3.bf16.xpose.msra.mxu0 %v223_v2 }
  0x1a   : > { %406 = vmatmul.mubr.msk.bf16.vlgmr.msra.gmra.mrb[0].mxu0 %vm218_vm1, %v436_v3 }
  0xed   : > { %v259_v4 = vpop.f32.mrb[0].mxu0 }
  0xee   : > { %v266_v5 = vmul.f32 0.17677669, %v259_v4  ;;  %v407_v6 = vpop.f32.mrb[1].mxu0 }
  0xef   : > { %v262_v7 = vpop.f32.mrb[2].mxu0 }
  0xf0   : > { %v399_v8 = vpack.c.bf16 %v266_v5, %v266_v5  ;;  %v267_v9 = vmul.f32 0.17677669, %v262_v7  ;;  %v408_v10 = vpop.f32.mrb[3].mxu0 }
  0xf2   : > { %277 = vst.msk [vmem:[%s201_s22] sm:$0xf] %vm276_vm2, %v399_v8  ;;  %v400_v11 = vpack.c.bf16 %v267_v9, %v267_v9 }
  0xf4   : > { %278 = vst.msk [vmem:[%s201_s22 + $0x4] sm:$0xf] %vm276_vm2, %v400_v11 }
  0xf5 PF: > { %s12_s11 = sadd.s32 1, %s459_s11   ;;  %s517_s9 = smov %s455_s10 }
  0xf6   : > { %p9_p5 = scmp.ge.s32.totalorder %s12_s11, 4   ;;  %s518_s10 = smov %s520_s12 }
  0xf8   :  { %11 = sbr.rel (!%p9_p5) target bundleno = 2 (0x2), region = 61 }

// kernel: evflownet_forward.24
= control target key start
LH: loop header
LB: loop body
LE: loop exit
PB: predicated region body
PF: predicated region fallthrough
CT: control target
= control target key end

     0   :  { %s448_s12 = smov 0   ;;  %s498_s0 = inlined_call_operand.vmem [shape: bf16[32,144], index: 0, kind: input, shape index: {}]   ;;  %s499_s1 = inlined_call_operand.vmem [shape: bf16[144,32], index: 1, kind: input, shape index: {}]   ;;  %s500_s2 = inlined_call_operand.vmem [shape: f32[1,32], index: 2, kind: input, shape index: {}]   ;;  %s501_s3 = inlined_call_operand.vmem [shape: f32[32,32], index: 3, kind: output, shape index: {}]  }
   0x1 LB: > { %s372_s13 = sadd.s32 4294967295, %s425_s12   ;;  %p376_p0 = scmp.ge.s32.totalorder %s425_s12, 1  ;;  %s425_s12 = sphi %s448_s12, %s13_s12  }
   0x2   : > { %p139_p1 = scmp.lt.s32.totalorder %s425_s12, 3 }
   0x4   : > { %p140_p2 = pnand %p376_p0, %p139_p1 }
   0x5   : > { %v407_v0 = vld [vmem:[%s499_s1] sm:$0xff] (!%p140_p2)   ;;  %v427_v1 = vmov (!%p140_p2), 0   ;;  %s377_s16 = sshll.u32 (!%p140_p2), %s372_s13, 1  ;;  %v408_v2 = vld [vmem:[%s499_s1 + $0x8] sm:$0xff] (!%p140_p2)   ;;  %v409_v3 = vld [vmem:[%s499_s1 + $0x10] sm:$0xff] (!%p140_p2)   ;;  %vm268_vm0 = vcmask (!%p140_p2), 130048  }
   0x6   : > { %143 = sbr.rel (%p140_p2) target bundleno = 259 (0x103), region = 32  ;;  %272 = vmatprep.subr.bf16.mxu0 (!%p140_p2), %v427_v1  ;;  %p165_p3 = scmp.lt.s32.totalorder (!%p140_p2), %s377_s16, 3  ;;  %v410_v4 = vld [vmem:[%s499_s1 + $0x18] sm:$0xff] (!%p140_p2)   ;;  %v411_v6 = vld [vmem:[%s499_s1 + $0x20] sm:$0xff] (!%p140_p2)   ;;  %v412_v7 = vld [vmem:[%s499_s1 + $0x28] sm:$0xff] (!%p140_p2)   ;;  %vm313_vm1 = vcmask (!%p140_p2), 261120  }
   0x7   : > { %273 = vmatpush1.bf16.msra.mxu0 (!%p140_p2), %v407_v0  ;;  %v413_v8 = vld [vmem:[%s499_s1 + $0x30] sm:$0xff] (!%p140_p2)   ;;  %v414_v9 = vld [vmem:[%s499_s1 + $0x38] sm:$0xff] (!%p140_p2)   ;;  %v415_v10 = vld [vmem:[%s499_s1 + $0x40] sm:$0xff] (!%p140_p2)  }
   0x8   : > { %274 = vmatprep.subr.bf16.mxu0 (!%p140_p2), %v427_v1  ;;  %v382_v12 = vld [vmem:[%s500_s2] ss:$0 sm:$0xff] (!%p140_p2) }
   0xb   : > { %275 = vmatpush1.bf16.msra.mxu0 (!%p140_p2), %v408_v2 }
   0xc   : > { %276 = vmatprep.subr.bf16.mxu0 (!%p140_p2), %v427_v1 }
   0xd   : > { %s503_s16 = smov (!%p165_p3, %s377_s16), 3 }
   0xe   : > { %s397_s21 = sshll.u32 %s503_s16, 3 }
   0xf   : > { %s169_s24 = scalar_lea.vmem %s498_s0, %s397_s21  ;;  %277 = vmatpush1.bf16.msra.mxu0 %v409_v3  ;;  %s175_s15 = scalar_lea.vmem %s501_s3, %s397_s21 }
  0x10   : > { %v418_v5 = vld [vmem:[%s169_s24 + $0x4] ss:$8 sps:$4 sm:$0xff]   ;;  %278 = vmatprep.subr.bf16.mxu0 %v427_v1  ;;  %v416_v11 = vld [vmem:[%s169_s24] ss:$8 sps:$4 sm:$0xff]  }
  0x11   : > { %394 = vmatprep.mubr.msk.bf16.mxu0 %vm268_vm0, %v418_v5 }
  0x13   : > { %279 = vmatpush1.bf16.msra.mxu0 %v410_v4 }
  0x14   : > { %280 = vmatprep.subr.bf16.mxu0 %v427_v1 }
  0x17   : > { %281 = vmatpush1.bf16.msra.mxu0 %v411_v6 }
  0x18   : > { %282 = vmatprep.subr.bf16.mxu0 %v427_v1 }
  0x1b   : > { %283 = vmatpush1.bf16.msra.mxu0 %v412_v7 }
  0x1c   : > { %284 = vmatprep.subr.bf16.mxu0 %v427_v1 }
  0x1f   : > { %285 = vmatpush1.bf16.msra.mxu0 %v413_v8 }
  0x20   : > { %286 = vmatprep.subr.bf16.mxu0 %v427_v1 }
  0x23   : > { %287 = vmatpush1.bf16.msra.mxu0 %v414_v9 }
  0x24   : > { %288 = vmatprep.subr.bf16.mxu0 %v427_v1 }
  0x27   : > { %289 = vmatpush1.bf16.msra.mxu0 %v415_v10 }
  0x2a   : > { %305 = vmatmul.mubr.bf16.vlgmr.msra.gmra.mrb[0].mxu0 %v416_v11 }
  0xfd   : > { %v306_v13 = vpop.f32.mrb[0].mxu0 }
  0xfe   : > { %v307_v14 = vadd.f32 %v382_v12, %v306_v13  ;;  %v308_v15 = vpop.f32.mrb[1].mxu0 }
  0xff   : > { %v309_v16 = vpop.f32.mrb[2].mxu0 }
 0x100   : > { %314 = vst.msk [vmem:[%s175_s15] sm:$0xff] %vm313_vm1, %v307_v14  ;;  %v310_v17 = vadd.f32 %v382_v12, %v309_v16  ;;  %v311_v18 = vpop.f32.mrb[3].mxu0 }
 0x102   : > { %315 = vst.msk [vmem:[%s175_s15 + $0x8] sm:$0xff] %vm313_vm1, %v310_v17 }
 0x103 PF: > { %s13_s12 = sadd.s32 1, %s425_s12  }
 0x104   : > { %p10_p4 = scmp.ge.s32.totalorder %s13_s12, 4  }
 0x106   :  { %12 = sbr.rel (!%p10_p4) target bundleno = 1 (0x1), region = 62 }

// kernel: evflownet_forward.26
= control target key start
LH: loop header
LB: loop body
LE: loop exit
PB: predicated region body
PF: predicated region fallthrough
CT: control target
= control target key end

     0   :  { %s465_s15 = smov 0   ;;  %s494_s0 = inlined_call_operand.vmem [shape: bf16[32,18], index: 0, kind: input, shape index: {}]   ;;  %s495_s1 = inlined_call_operand.vmem [shape: bf16[18,32], index: 1, kind: input, shape index: {}]   ;;  %s496_s2 = inlined_call_operand.vmem [shape: f32[1,32], index: 2, kind: input, shape index: {}]   ;;  %s497_s3 = inlined_call_operand.vmem [shape: f32[32,32], index: 3, kind: input, shape index: {}]   ;;  %s498_s4 = inlined_call_operand.vmem [shape: bf16[32,32], index: 4, kind: output, shape index: {}]  }
   0x1 LB: > { %s384_s16 = sadd.s32 4294967295, %s436_s15   ;;  %p388_p0 = scmp.ge.s32.totalorder %s436_s15, 1  ;;  %s436_s15 = sphi %s465_s15, %s14_s15  }
   0x2   : > { %p174_p1 = scmp.lt.s32.totalorder %s436_s15, 3 }
   0x4   : > { %p175_p2 = pnand %p388_p0, %p174_p1 }
   0x5   : > { %v427_v0 = vld [vmem:[%s495_s1] sm:$0xff] (!%p175_p2)   ;;  %v438_v1 = vmov (!%p175_p2), 0.0   ;;  %v428_v2 = vld [vmem:[%s495_s1 + $0x8] ss:$0 sps:$4 sm:$0x11] (!%p175_p2)   ;;  %vm254_vm0 = vcmask (!%p175_p2), 1040384  }
   0x6   : > { %178 = sbr.rel (%p175_p2) target bundleno = 240 (0xf0), region = 36  ;;  %409 = vmatprep.subr.bf16.mxu0 (!%p175_p2), %v438_v1  ;;  %s389_s21 = sshll.u32 (!%p175_p2), %s384_s16, 1  ;;  %v256_v3 = vsel (!%p175_p2), %vm254_vm0, %v428_v2, 0  ;;  %vm439_vm1 = vmmov (!%p175_p2), 0   ;;  %vm250_vm2 = vcmask (!%p175_p2), 146432   ;;  %vm313_vm3 = vcmask (!%p175_p2), 257024  }
   0x7   : > { %410 = vmatpush3.bf16.msra.mxu0 (!%p175_p2), %v427_v0  ;;  %413 = vmatprep.mubr.msk.bf16.mxu0 (!%p175_p2), %vm439_vm1, %v438_v1  ;;  %p206_p3 = scmp.lt.s32.totalorder (!%p175_p2), %s389_s21, 3  ;;  %v395_v5 = vld [vmem:[%s496_s2] ss:$0 sm:$0xff] (!%p175_p2) }
   0x8   : > { %411 = vmatprep.subr.bf16.mxu0 (!%p175_p2), %v438_v1 }
   0xb   : > { %412 = vmatpush3.bf16.msra.mxu0 (!%p175_p2), %v256_v3 }
   0xd   : > { %s500_s21 = smov (!%p206_p3, %s389_s21), 3 }
   0xe   : > { %s390_s22 = sshll.u32 %s500_s21, 2  ;;  %s392_s26 = sshll.u32 %s500_s21, 3 }
   0xf   : > { %s209_s25 = scalar_lea.vmem %s494_s0, %s390_s22  ;;  %s215_s29 = scalar_lea.vmem %s497_s3, %s392_s26 }
  0x10   : > { %v429_v4 = vld [vmem:[%s209_s25] sm:$0xff]   ;;  %v300_v11 = vld [vmem:[%s215_s29 + $0x8] sm:$0xff]  ;;  %s221_s8 = scalar_lea.vmem %s498_s4, %s390_s22 }
  0x11   : > { %414 = vmatmul.mubr.msk.bf16.vlgmr.msra.gmra.mrb[0].mxu0 %vm250_vm2, %v429_v4  ;;  %v299_v7 = vld [vmem:[%s215_s29] sm:$0xff] }
  0xe4   : > { %v292_v6 = vpop.f32.mrb[0].mxu0 }
  0xe5   : > { %v293_v8 = vadd.f32 %v395_v5, %v292_v6  ;;  %v415_v9 = vpop.f32.mrb[1].mxu0 }
  0xe6   : > { %v295_v10 = vpop.f32.mrb[2].mxu0 }
  0xe7   : > { %v301_v12 = vadd.f32 %v299_v7, %v293_v8  ;;  %v296_v13 = vadd.f32 %v395_v5, %v295_v10  ;;  %v416_v14 = vpop.f32.mrb[3].mxu0 }
  0xe9   : > { %v303_v15 = vmax.f32 %v301_v12, 0.0  ;;  %v302_v16 = vadd.f32 %v300_v11, %v296_v13 }
  0xeb   : > { %v404_v17 = vpack.c.bf16 %v303_v15, %v303_v15  ;;  %v304_v18 = vmax.f32 %v302_v16, 0.0 }
  0xed   : > { %314 = vst.msk [vmem:[%s221_s8] sm:$0xf] %vm313_vm3, %v404_v17  ;;  %v405_v19 = vpack.c.bf16 %v304_v18, %v304_v18 }
  0xef   : > { %315 = vst.msk [vmem:[%s221_s8 + $0x4] sm:$0xf] %vm313_vm3, %v405_v19 }
  0xf0 PF: > { %s14_s15 = sadd.s32 1, %s436_s15  }
  0xf1   : > { %p11_p4 = scmp.ge.s32.totalorder %s14_s15, 4  }
  0xf3   :  { %13 = sbr.rel (!%p11_p4) target bundleno = 1 (0x1), region = 69 }

// kernel: evflownet_forward.27
= control target key start
LH: loop header
LB: loop body
LE: loop exit
PB: predicated region body
PF: predicated region fallthrough
CT: control target
= control target key end

     0   :  { %s1028_s21 = smov 0   ;;  %s1178_s0 = inlined_call_operand.vmem [shape: bf16[32,216], index: 0, kind: input, shape index: {}]   ;;  %s1179_s1 = inlined_call_operand.vmem [shape: bf16[216,48], index: 1, kind: input, shape index: {}]   ;;  %s1180_s2 = inlined_call_operand.vmem [shape: bf16[32,288], index: 2, kind: input, shape index: {}]   ;;  %s1181_s3 = inlined_call_operand.vmem [shape: bf16[288,48], index: 3, kind: input, shape index: {}]   ;;  %s1182_s4 = inlined_call_operand.vmem [shape: f32[1,48], index: 4, kind: input, shape index: {}]   ;;  %s1183_s5 = inlined_call_operand.vmem [shape: f32[32,48], index: 5, kind: input, shape index: {}]   ;;  %s1184_s6 = inlined_call_operand.vmem [shape: f32[32,48], index: 6, kind: output, shape index: {}]  }
   0x1 LB: > { %s831_s22 = sadd.s32 4294967295, %s988_s21   ;;  %p835_p0 = scmp.ge.s32.totalorder %s988_s21, 1  ;;  %s988_s21 = sphi %s1028_s21, %s16_s21  }
   0x2   : > { %p237_p1 = scmp.lt.s32.totalorder %s988_s21, 3 }
   0x4   : > { %p238_p2 = pnand %p835_p0, %p237_p1 }
   0x5   : > { %v935_v0 = vld [vmem:[%s1179_s1] sm:$0xff] (!%p238_p2)   ;;  %v990_v1 = vmov (!%p238_p2), 0   ;;  %v936_v2 = vld [vmem:[%s1179_s1 + $0x8] sm:$0xff] (!%p238_p2)   ;;  %v939_v5 = vld [vmem:[%s1179_s1 + $0x10] sm:$0xff] (!%p238_p2)   ;;  %s836_s15 = sshll.u32 (!%p238_p2), %s831_s22, 1  ;;  %v991_v30 = vmov (!%p238_p2), 0.0  }
   0x6   : > { %241 = sbr.rel (%p238_p2) target bundleno = 309 (0x135), region = 44  ;;  %682 = vmatprep.subr.bf16.mxu1 (!%p238_p2), %v990_v1  ;;  %v937_v3 = vld [vmem:[%s1181_s3 + $0x40] sm:$0xff] (!%p238_p2)   ;;  %v940_v6 = vld [vmem:[%s1181_s3 + $0x48] sm:$0xff] (!%p238_p2)   ;;  %v943_v8 = vld [vmem:[%s1181_s3 + $0x50] sm:$0xff] (!%p238_p2)   ;;  %p280_p3 = scmp.lt.s32.totalorder (!%p238_p2), %s836_s15, 3  ;;  %vm674_vm0 = vcmask (!%p238_p2), 719872  }
   0x7   : > { %683 = vmatpush1.bf16.msra.mxu1 (!%p238_p2), %v935_v0  ;;  %v938_v4 = vld [vmem:[%s1181_s3] sm:$0xff] (!%p238_p2)   ;;  %890 = vmatprep.subr.bf16.mxu0 (!%p238_p2), %v937_v3  ;;  %v941_v7 = vld [vmem:[%s1181_s3 + $0x8] sm:$0xff] (!%p238_p2)   ;;  %v944_v9 = vld [vmem:[%s1181_s3 + $0x10] sm:$0xff] (!%p238_p2)   ;;  %vm992_vm1 = vmmov (!%p238_p2), 0   ;;  %vm498_vm2 = vcmask (!%p238_p2), 261120   ;;  %vm678_vm3 = vcmask (!%p238_p2), 1043456  }
   0x8   : > { %684 = vmatprep.subr.bf16.mxu1 (!%p238_p2), %v990_v1  ;;  %891 = vmatpush3.bf16.msra.mxu0 (!%p238_p2), %v938_v4  ;;  %v942_v10 = vld [vmem:[%s1179_s1 + $0x18] sm:$0xff] (!%p238_p2)   ;;  %v945_v12 = vld [vmem:[%s1179_s1 + $0x20] sm:$0xff] (!%p238_p2)   ;;  %v948_v15 = vld [vmem:[%s1179_s1 + $0x28] sm:$0xff] (!%p238_p2)   ;;  %vm748_vm4 = vcmask (!%p238_p2), 392192  }
   0x9   : > { %892 = vmatprep.subr.bf16.mxu0 (!%p238_p2), %v940_v6  ;;  %v946_v11 = vld [vmem:[%s1181_s3 + $0x58] sm:$0xff] (!%p238_p2)   ;;  %v949_v14 = vld [vmem:[%s1181_s3 + $0x60] sm:$0xff] (!%p238_p2)   ;;  %v952_v17 = vld [vmem:[%s1181_s3 + $0x68] sm:$0xff] (!%p238_p2)  }
   0xa   : > { %v947_v13 = vld [vmem:[%s1181_s3 + $0x18] sm:$0xff] (!%p238_p2)   ;;  %v950_v16 = vld [vmem:[%s1181_s3 + $0x20] sm:$0xff] (!%p238_p2)   ;;  %v951_v18 = vld [vmem:[%s1179_s1 + $0x30] sm:$0xff] (!%p238_p2)  }
   0xb   : > { %685 = vmatpush1.bf16.msra.mxu1 (!%p238_p2), %v936_v2  ;;  %v953_v19 = vld [vmem:[%s1181_s3 + $0x28] sm:$0xff] (!%p238_p2)   ;;  %v955_v20 = vld [vmem:[%s1181_s3 + $0x70] sm:$0xff] (!%p238_p2)   ;;  %v954_v21 = vld [vmem:[%s1179_s1 + $0x38] sm:$0xff] (!%p238_p2)  }
   0xc   : > { %686 = vmatprep.subr.bf16.mxu1 (!%p238_p2), %v990_v1  ;;  %893 = vmatpush3.bf16.msra.mxu0 (!%p238_p2), %v941_v7  ;;  %v956_v22 = vld [vmem:[%s1181_s3 + $0x30] sm:$0xff] (!%p238_p2)   ;;  %v958_v23 = vld [vmem:[%s1181_s3 + $0x78] sm:$0xff] (!%p238_p2)   ;;  %v957_v26 = vld [vmem:[%s1179_s1 + $0x40] sm:$0xff] (!%p238_p2)  }
   0xd   : > { %894 = vmatprep.subr.bf16.mxu0 %v943_v8  ;;  %s1186_s15 = smov (!%p280_p3, %s836_s15), 3  ;;  %v959_v25 = vld [vmem:[%s1181_s3 + $0x38] sm:$0xff]   ;;  %v965_v28 = vld [vmem:[%s1181_s3 + $0x80] sm:$0xff]   ;;  %v964_v29 = vld [vmem:[%s1179_s1 + $0x48] sm:$0xff]  }
   0xe   : > { %s923_s11 = smul.u32 12, %s1186_s15  ;;  %s1122_s7 = sshll.u32 %s1186_s15, 3  ;;  %v967_v32 = vld [vmem:[%s1181_s3 + $0x88] sm:$0xff]   ;;  %v966_v33 = vld [vmem:[%s1179_s1 + $0x50] sm:$0xff]   ;;  %v968_v35 = vld [vmem:[%s1179_s1 + $0x58] sm:$0xff]  }
   0xf   : > { %687 = vmatpush1.bf16.msra.mxu1 %v939_v5  ;;  %s1133_s12 = scalar_lea.vmem %s1178_s0, %s1122_s7  ;;  %v969_v36 = vld [vmem:[%s1179_s1 + $0x60] sm:$0xff]   ;;  %v970_v37 = vld [vmem:[%s1179_s1 + $0x68] ss:$0 sps:$4 sm:$0xff]   ;;  %s297_s30 = scalar_lea.vmem %s1183_s5, %s1122_s7 }
  0x10   : > { %688 = vmatprep.subr.bf16.mxu1 %v990_v1  ;;  %895 = vmatpush3.bf16.msra.mxu0 %v944_v9  ;;  %s1106_s23 = scalar_lea.vmem %s1180_s2, %s923_s11  ;;  %v973_v31 = vld [vmem:[%s1133_s12 + $0x4] ss:$8 sps:$4 sm:$0xff]   ;;  %v680_v38 = vsel %vm678_vm3, %v970_v37, 0  ;;  %v971_v39 = vld [vmem:[%s1133_s12] ss:$8 sps:$4 sm:$0xff]   ;;  %s303_s12 = scalar_lea.vmem %s1184_s6, %s1122_s7 }
  0x11   : > { %896 = vmatprep.subr.bf16.mxu0 %v946_v11  ;;  %v962_v24 = vld [vmem:[%s1106_s23 + $0x4] ss:$12 sps:$4 sm:$0xff]   ;;  %v960_v27 = vld [vmem:[%s1106_s23] ss:$12 sps:$4 sm:$0xff]   ;;  %883 = vmatprep.mubr.msk.bf16.mxu1 %vm674_vm0, %v973_v31  ;;  %v963_v34 = vld [vmem:[%s1106_s23 + $0x8] ss:$12 sps:$4 sm:$0xff]  }
  0x12   : > { %534 = vmatprep.mubr.bf16.mxu0 %v962_v24  ;;  %v884_v53 = vld [vmem:[%s1182_s4] ss:$0 sm:$0xff]  ;;  %v733_v61 = vld [vmem:[%s297_s30 + $0x8] sm:$0xff] }
  0x13   : > { %689 = vmatpush1.bf16.msra.mxu1 %v942_v10  ;;  %v732_v56 = vld [vmem:[%s297_s30] sm:$0xff] }
  0x14   : > { %690 = vmatprep.subr.bf16.mxu1 %v990_v1  ;;  %897 = vmatpush3.bf16.msra.mxu0 %v947_v13 }
  0x15   : > { %898 = vmatprep.subr.bf16.mxu0 %v949_v14 }
  0x17   : > { %691 = vmatpush1.bf16.msra.mxu1 %v945_v12 }
  0x18   : > { %692 = vmatprep.subr.bf16.mxu1 %v990_v1  ;;  %899 = vmatpush3.bf16.msra.mxu0 %v950_v16 }
  0x19   : > { %900 = vmatprep.subr.bf16.mxu0 %v952_v17 }
  0x1b   : > { %693 = vmatpush1.bf16.msra.mxu1 %v948_v15 }
  0x1c   : > { %694 = vmatprep.subr.bf16.mxu1 %v990_v1  ;;  %901 = vmatpush3.bf16.msra.mxu0 %v953_v19 }
  0x1d   : > { %902 = vmatprep.subr.bf16.mxu0 %v955_v20 }
  0x1f   : > { %695 = vmatpush1.bf16.msra.mxu1 %v951_v18 }
  0x20   : > { %696 = vmatprep.subr.bf16.mxu1 %v990_v1  ;;  %903 = vmatpush3.bf16.msra.mxu0 %v956_v22 }
  0x21   : > { %904 = vmatprep.subr.bf16.mxu0 %v958_v23 }
  0x23   : > { %697 = vmatpush1.bf16.msra.mxu1 %v954_v21 }
  0x24   : > { %698 = vmatprep.subr.bf16.mxu1 %v990_v1  ;;  %905 = vmatpush3.bf16.msra.mxu0 %v959_v25 }
  0x25   : > { %915 = vmatprep.subr.bf16.mxu0 %v991_v30 }
  0x27   : > { %699 = vmatpush1.bf16.msra.mxu1 %v957_v26  ;;  %535 = vmatmul.mubr.bf16.vlgmr.msra.gmra.mrb[0].mxu0 %v960_v27 }
  0x28   : > { %700 = vmatprep.subr.bf16.mxu1 %v990_v1  ;;  %916 = vmatpush3.bf16.msra.mxu0 %v965_v28 }
  0x29   : > { %919 = vmatprep.mubr.msk.bf16.mxu0 %vm992_vm1, %v991_v30  ;;  %917 = vmatprep.subr.bf16.mxu0 %v991_v30 }
  0x2b   : > { %701 = vmatpush1.bf16.msra.mxu1 %v964_v29 }
  0x2c   : > { %702 = vmatprep.subr.bf16.mxu1 %v990_v1  ;;  %918 = vmatpush3.bf16.msra.mxu0 %v967_v32 }
  0x2f   : > { %703 = vmatpush1.bf16.msra.mxu1 %v966_v33  ;;  %920 = vmatmul.mubr.msk.bf16.vlgmr.msra.gmra.mrb[4].mxu0 %vm498_vm2, %v963_v34 }
  0x30   : > { %704 = vmatprep.subr.bf16.mxu1 %v990_v1 }
  0x33   : > { %705 = vmatpush1.bf16.msra.mxu1 %v968_v35 }
  0x34   : > { %706 = vmatprep.subr.bf16.mxu1 %v990_v1 }
  0x37   : > { %707 = vmatpush1.bf16.msra.mxu1 %v969_v36 }
  0x38   : > { %708 = vmatprep.subr.bf16.mxu1 %v990_v1 }
  0x3b   : > { %709 = vmatpush1.bf16.msra.mxu1 %v680_v38 }
  0x3e   : > { %715 = vmatmul.mubr.bf16.vlgmr.msra.gmra.mrb[0].mxu1 %v971_v39 }
  0xfa   : > { %v906_v40 = vpop.f32.mrb[0].mxu0 }
  0xfb   : > { %v907_v41 = vpop.f32.mrb[1].mxu0 }
  0xfc   : > { %v908_v42 = vadd.f32 %v907_v41, %v906_v40  ;;  %v909_v43 = vpop.f32.mrb[2].mxu0 }
  0xfd   : > { %v910_v44 = vpop.f32.mrb[3].mxu0 }
  0xfe   : > { %v911_v45 = vadd.f32 %v910_v44, %v909_v43 }
 0x102   : > { %v577_v46 = vpop.f32.mrb[4].mxu0 }
 0x103   : > { %v578_v47 = vadd.f32 %v908_v42, %v577_v46  ;;  %v921_v48 = vpop.f32.mrb[5].mxu0 }
 0x104   : > { %v580_v49 = vpop.f32.mrb[6].mxu0 }
 0x105   : > { %v581_v50 = vadd.f32 %v911_v45, %v580_v49  ;;  %v922_v51 = vpop.f32.mrb[7].mxu0 }
 0x111   : > { %v716_v52 = vpop.f32.mrb[0].mxu1 }
 0x112   : > { %v717_v54 = vadd.f32 %v716_v52, %v578_v47  ;;  %v718_v55 = vpop.f32.mrb[1].mxu1 }
 0x113   : > { %v719_v57 = vpop.f32.mrb[2].mxu1 }
 0x114   : > { %v730_v58 = vadd.f32 %v884_v53, %v717_v54  ;;  %v720_v59 = vadd.f32 %v719_v57, %v581_v50  ;;  %v721_v60 = vpop.f32.mrb[3].mxu1 }
 0x116   : > { %v734_v62 = vadd.f32 %v732_v56, %v730_v58  ;;  %v731_v63 = vadd.f32 %v884_v53, %v720_v59 }
 0x118   : > { %v885_v0 = vmul.f32 -1.442695, %v734_v62  ;;  %v735_v1 = vadd.f32 %v733_v61, %v731_v63 }
 0x11a   : > { %974 = vpow2.f32 %v885_v0  ;;  %v886_v2 = vmul.f32 -1.442695, %v735_v1 }
 0x11c   : > { %976 = vpow2.f32 %v886_v2 }
 0x124   : > { %v975_v3 = vpop.eup %974 }
 0x125   : > { %v742_v4 = vadd.f32 1.0, %v975_v3 }
 0x126   : > { %v977_v5 = vpop.eup %976 }
 0x127   : > { %978 = vrcp.f32 %v742_v4  ;;  %v743_v6 = vadd.f32 1.0, %v977_v5 }
 0x129   : > { %980 = vrcp.f32 %v743_v6 }
 0x131   : > { %v979_v7 = vpop.eup %978 }
 0x132   : > { %749 = vst.msk [vmem:[%s303_s12] sm:$0xff] %vm748_vm4, %v979_v7 }
 0x133   : > { %v981_v8 = vpop.eup %980 }
 0x134   : > { %750 = vst.msk [vmem:[%s303_s12 + $0x8] sm:$0xff] %vm748_vm4, %v981_v8 }
 0x135 PF: > { %s16_s21 = sadd.s32 1, %s988_s21  }
 0x136   : > { %p13_p4 = scmp.ge.s32.totalorder %s16_s21, 4  }
 0x138   :  { %15 = sbr.rel (!%p13_p4) target bundleno = 1 (0x1), region = 80 }

// kernel: evflownet_forward.28
= control target key start
LH: loop header
LB: loop body
LE: loop exit
PB: predicated region body
PF: predicated region fallthrough
CT: control target
= control target key end

     0   :  { %s1160_s27 = smov 0   ;;  %s1322_s0 = inlined_call_operand.vmem [shape: bf16[32,216], index: 0, kind: input, shape index: {}]   ;;  %s1323_s1 = inlined_call_operand.vmem [shape: bf16[216,24], index: 1, kind: input, shape index: {}]   ;;  %s1324_s2 = inlined_call_operand.vmem [shape: bf16[32,288], index: 2, kind: input, shape index: {}]   ;;  %s1325_s3 = inlined_call_operand.vmem [shape: bf16[288,24], index: 3, kind: input, shape index: {}]   ;;  %s1326_s4 = inlined_call_operand.vmem [shape: f32[1,24], index: 4, kind: input, shape index: {}]   ;;  %s1327_s5 = inlined_call_operand.vmem [shape: f32[32,24], index: 5, kind: input, shape index: {}]   ;;  %s1328_s6 = inlined_call_operand.vmem [shape: f32[32,24], index: 6, kind: input, shape index: {}]   ;;  %s1329_s7 = inlined_call_operand.vmem [shape: f32[32,24], index: 7, kind: input, shape index: {}]   ;;  %s1330_s8 = inlined_call_operand.vmem [shape: f32[32,24], index: 8, kind: output, shape index: {}]  }
   0x1 LB: > { %s955_s28 = sadd.s32 4294967295, %s1110_s27   ;;  %p959_p0 = scmp.ge.s32.totalorder %s1110_s27, 1  ;;  %s1110_s27 = sphi %s1160_s27, %s18_s27  }
   0x2   : > { %p309_p1 = scmp.lt.s32.totalorder %s1110_s27, 3 }
   0x4   : > { %p310_p2 = pnand %p959_p0, %p309_p1 }
   0x5   : > { %v1061_v0 = vld [vmem:[%s1323_s1] sm:$0xff] (!%p310_p2)   ;;  %v1112_v1 = vmov (!%p310_p2), 0   ;;  %v1062_v2 = vld [vmem:[%s1323_s1 + $0x8] sm:$0xff] (!%p310_p2)   ;;  %v1065_v5 = vld [vmem:[%s1323_s1 + $0x10] sm:$0xff] (!%p310_p2)   ;;  %s960_s23 = sshll.u32 (!%p310_p2), %s955_s28, 1  ;;  %v1113_v30 = vmov (!%p310_p2), 0.0  }
   0x6   : > { %313 = sbr.rel (%p310_p2) target bundleno = 298 (0x12a), region = 52  ;;  %780 = vmatprep.subr.bf16.mxu1 (!%p310_p2), %v1112_v1  ;;  %v1063_v3 = vld [vmem:[%s1325_s3 + $0x40] sm:$0xff] (!%p310_p2)   ;;  %v1066_v6 = vld [vmem:[%s1325_s3 + $0x48] sm:$0xff] (!%p310_p2)   ;;  %v1069_v8 = vld [vmem:[%s1325_s3 + $0x50] sm:$0xff] (!%p310_p2)   ;;  %p366_p3 = scmp.lt.s32.totalorder (!%p310_p2), %s960_s23, 3  ;;  %vm772_vm0 = vcmask (!%p310_p2), 719872  }
   0x7   : > { %781 = vmatpush1.bf16.msra.mxu1 (!%p310_p2), %v1061_v0  ;;  %v1064_v4 = vld [vmem:[%s1325_s3] sm:$0xff] (!%p310_p2)   ;;  %1016 = vmatprep.subr.bf16.mxu0 (!%p310_p2), %v1063_v3  ;;  %v1067_v7 = vld [vmem:[%s1325_s3 + $0x8] sm:$0xff] (!%p310_p2)   ;;  %v1070_v9 = vld [vmem:[%s1325_s3 + $0x10] sm:$0xff] (!%p310_p2)   ;;  %vm1114_vm1 = vmmov (!%p310_p2), 0   ;;  %vm596_vm2 = vcmask (!%p310_p2), 261120   ;;  %vm776_vm3 = vcmask (!%p310_p2), 1043456  }
   0x8   : > { %782 = vmatprep.subr.bf16.mxu1 (!%p310_p2), %v1112_v1  ;;  %1017 = vmatpush3.bf16.msra.mxu0 (!%p310_p2), %v1064_v4  ;;  %v1068_v10 = vld [vmem:[%s1323_s1 + $0x18] sm:$0xff] (!%p310_p2)   ;;  %v1071_v12 = vld [vmem:[%s1323_s1 + $0x20] sm:$0xff] (!%p310_p2)   ;;  %v1074_v15 = vld [vmem:[%s1323_s1 + $0x28] sm:$0xff] (!%p310_p2)   ;;  %vm848_vm4 = vcmask (!%p310_p2), 195584  }
   0x9   : > { %1018 = vmatprep.subr.bf16.mxu0 (!%p310_p2), %v1066_v6  ;;  %v1072_v11 = vld [vmem:[%s1325_s3 + $0x58] sm:$0xff] (!%p310_p2)   ;;  %v1075_v14 = vld [vmem:[%s1325_s3 + $0x60] sm:$0xff] (!%p310_p2)   ;;  %v1078_v17 = vld [vmem:[%s1325_s3 + $0x68] sm:$0xff] (!%p310_p2)  }
   0xa   : > { %v1073_v13 = vld [vmem:[%s1325_s3 + $0x18] sm:$0xff] (!%p310_p2)   ;;  %v1076_v16 = vld [vmem:[%s1325_s3 + $0x20] sm:$0xff] (!%p310_p2)   ;;  %v1077_v18 = vld [vmem:[%s1323_s1 + $0x30] sm:$0xff] (!%p310_p2)  }
   0xb   : > { %783 = vmatpush1.bf16.msra.mxu1 (!%p310_p2), %v1062_v2  ;;  %v1079_v19 = vld [vmem:[%s1325_s3 + $0x28] sm:$0xff] (!%p310_p2)   ;;  %v1081_v20 = vld [vmem:[%s1325_s3 + $0x70] sm:$0xff] (!%p310_p2)   ;;  %v1080_v21 = vld [vmem:[%s1323_s1 + $0x38] sm:$0xff] (!%p310_p2)  }
   0xc   : > { %784 = vmatprep.subr.bf16.mxu1 (!%p310_p2), %v1112_v1  ;;  %1019 = vmatpush3.bf16.msra.mxu0 (!%p310_p2), %v1067_v7  ;;  %v1082_v22 = vld [vmem:[%s1325_s3 + $0x30] sm:$0xff] (!%p310_p2)   ;;  %v1084_v23 = vld [vmem:[%s1325_s3 + $0x78] sm:$0xff] (!%p310_p2)   ;;  %v1083_v26 = vld [vmem:[%s1323_s1 + $0x40] sm:$0xff] (!%p310_p2)  }
   0xd   : > { %1020 = vmatprep.subr.bf16.mxu0 %v1069_v8  ;;  %s1332_s23 = smov (!%p366_p3, %s960_s23), 3  ;;  %v1085_v25 = vld [vmem:[%s1325_s3 + $0x38] sm:$0xff]   ;;  %v1091_v28 = vld [vmem:[%s1325_s3 + $0x80] sm:$0xff]   ;;  %v1090_v29 = vld [vmem:[%s1323_s1 + $0x48] sm:$0xff]  }
   0xe   : > { %s1049_s21 = smul.u32 12, %s1332_s23  ;;  %v1093_v32 = vld [vmem:[%s1325_s3 + $0x88] sm:$0xff]   ;;  %v1092_v33 = vld [vmem:[%s1323_s1 + $0x50] sm:$0xff]   ;;  %v1094_v35 = vld [vmem:[%s1323_s1 + $0x58] sm:$0xff]  }
   0xf   : > { %785 = vmatpush1.bf16.msra.mxu1 %v1065_v5  ;;  %v1095_v36 = vld [vmem:[%s1323_s1 + $0x60] sm:$0xff]   ;;  %v1096_v37 = vld [vmem:[%s1323_s1 + $0x68] ss:$0 sps:$4 sm:$0xff]  }
  0x10   : > { %786 = vmatprep.subr.bf16.mxu1 %v1112_v1  ;;  %1021 = vmatpush3.bf16.msra.mxu0 %v1070_v9  ;;  %s1241_s28 = scalar_lea.vmem %s1324_s2, %s1049_s21  ;;  %s1261_s21 = sshll.u32 %s1332_s23, 3  ;;  %v778_v38 = vsel %vm776_vm3, %v1096_v37, 0  ;;  %v1012_v53 = vld [vmem:[%s1326_s4] ss:$0 sm:$0xff] }
  0x11   : > { %1022 = vmatprep.subr.bf16.mxu0 %v1072_v11  ;;  %v1088_v24 = vld [vmem:[%s1241_s28 + $0x4] ss:$12 sps:$4 sm:$0xff]   ;;  %v1086_v27 = vld [vmem:[%s1241_s28] ss:$12 sps:$4 sm:$0xff]   ;;  %s1272_s29 = scalar_lea.vmem %s1322_s0, %s1261_s21  ;;  %v1089_v34 = vld [vmem:[%s1241_s28 + $0x8] ss:$12 sps:$4 sm:$0xff]   ;;  %s383_s20 = scalar_lea.vmem %s1327_s5, %s1261_s21 }
  0x12   : > { %632 = vmatprep.mubr.bf16.mxu0 %v1088_v24  ;;  %v1099_v31 = vld [vmem:[%s1272_s29 + $0x4] ss:$8 sps:$4 sm:$0xff]   ;;  %v1097_v39 = vld [vmem:[%s1272_s29] ss:$8 sps:$4 sm:$0xff]   ;;  %s389_s29 = scalar_lea.vmem %s1328_s6, %s1261_s21  ;;  %s395_s23 = scalar_lea.vmem %s1329_s7, %s1261_s21 }
  0x13   : > { %787 = vmatpush1.bf16.msra.mxu1 %v1068_v10  ;;  %1011 = vmatprep.mubr.msk.bf16.mxu1 %vm772_vm0, %v1099_v31  ;;  %v830_v56 = vld [vmem:[%s383_s20] sm:$0xff]  ;;  %v831_v61 = vld [vmem:[%s383_s20 + $0x8] sm:$0xff]  ;;  %s401_s12 = scalar_lea.vmem %s1330_s8, %s1261_s21 }
  0x14   : > { %788 = vmatprep.subr.bf16.mxu1 %v1112_v1  ;;  %1023 = vmatpush3.bf16.msra.mxu0 %v1073_v13  ;;  %v835_v2 = vld [vmem:[%s389_s29 + $0x8] sm:$0xff]  ;;  %v836_v4 = vld [vmem:[%s395_s23] sm:$0xff] }
  0x15   : > { %1024 = vmatprep.subr.bf16.mxu0 %v1075_v14  ;;  %v839_v5 = vsub.f32 1.0, %v835_v2  ;;  %v837_v6 = vld [vmem:[%s395_s23 + $0x8] sm:$0xff] }
  0x17   : > { %789 = vmatpush1.bf16.msra.mxu1 %v1071_v12  ;;  %v841_v9 = vmul.f32 %v839_v5, %v837_v6 }
  0x18   : > { %790 = vmatprep.subr.bf16.mxu1 %v1112_v1  ;;  %1025 = vmatpush3.bf16.msra.mxu0 %v1076_v16 }
  0x19   : > { %1026 = vmatprep.subr.bf16.mxu0 %v1078_v17 }
  0x1b   : > { %791 = vmatpush1.bf16.msra.mxu1 %v1074_v15 }
  0x1c   : > { %792 = vmatprep.subr.bf16.mxu1 %v1112_v1  ;;  %1027 = vmatpush3.bf16.msra.mxu0 %v1079_v19 }
  0x1d   : > { %1028 = vmatprep.subr.bf16.mxu0 %v1081_v20 }
  0x1f   : > { %793 = vmatpush1.bf16.msra.mxu1 %v1077_v18 }
  0x20   : > { %794 = vmatprep.subr.bf16.mxu1 %v1112_v1  ;;  %1029 = vmatpush3.bf16.msra.mxu0 %v1082_v22 }
  0x21   : > { %1030 = vmatprep.subr.bf16.mxu0 %v1084_v23 }
  0x23   : > { %795 = vmatpush1.bf16.msra.mxu1 %v1080_v21 }
  0x24   : > { %796 = vmatprep.subr.bf16.mxu1 %v1112_v1  ;;  %1031 = vmatpush3.bf16.msra.mxu0 %v1085_v25 }
  0x25   : > { %1041 = vmatprep.subr.bf16.mxu0 %v1113_v30 }
  0x27   : > { %797 = vmatpush1.bf16.msra.mxu1 %v1083_v26  ;;  %633 = vmatmul.mubr.bf16.vlgmr.msra.gmra.mrb[0].mxu0 %v1086_v27 }
  0x28   : > { %798 = vmatprep.subr.bf16.mxu1 %v1112_v1  ;;  %1042 = vmatpush3.bf16.msra.mxu0 %v1091_v28 }
  0x29   : > { %1045 = vmatprep.mubr.msk.bf16.mxu0 %vm1114_vm1, %v1113_v30  ;;  %1043 = vmatprep.subr.bf16.mxu0 %v1113_v30 }
  0x2b   : > { %799 = vmatpush1.bf16.msra.mxu1 %v1090_v29 }
  0x2c   : > { %800 = vmatprep.subr.bf16.mxu1 %v1112_v1  ;;  %1044 = vmatpush3.bf16.msra.mxu0 %v1093_v32 }
  0x2f   : > { %801 = vmatpush1.bf16.msra.mxu1 %v1092_v33  ;;  %1046 = vmatmul.mubr.msk.bf16.vlgmr.msra.gmra.mrb[4].mxu0 %vm596_vm2, %v1089_v34 }
  0x30   : > { %802 = vmatprep.subr.bf16.mxu1 %v1112_v1 }
  0x33   : > { %803 = vmatpush1.bf16.msra.mxu1 %v1094_v35 }
  0x34   : > { %804 = vmatprep.subr.bf16.mxu1 %v1112_v1 }
  0x37   : > { %805 = vmatpush1.bf16.msra.mxu1 %v1095_v36 }
  0x38   : > { %806 = vmatprep.subr.bf16.mxu1 %v1112_v1  ;;  %v834_v1 = vld [vmem:[%s389_s29] sm:$0xff] }
  0x39   : > { %v838_v3 = vsub.f32 1.0, %v834_v1 }
  0x3b   : > { %807 = vmatpush1.bf16.msra.mxu1 %v778_v38  ;;  %v840_v7 = vmul.f32 %v838_v3, %v836_v4 }
  0x3e   : > { %813 = vmatmul.mubr.bf16.vlgmr.msra.gmra.mrb[0].mxu1 %v1097_v39 }
  0xfa   : > { %v1032_v40 = vpop.f32.mrb[0].mxu0 }
  0xfb   : > { %v1033_v41 = vpop.f32.mrb[1].mxu0 }
  0xfc   : > { %v1034_v42 = vadd.f32 %v1033_v41, %v1032_v40  ;;  %v1035_v43 = vpop.f32.mrb[2].mxu0 }
  0xfd   : > { %v1036_v44 = vpop.f32.mrb[3].mxu0 }
  0xfe   : > { %v1037_v45 = vadd.f32 %v1036_v44, %v1035_v43 }
 0x102   : > { %v675_v46 = vpop.f32.mrb[4].mxu0 }
 0x103   : > { %v676_v47 = vadd.f32 %v1034_v42, %v675_v46  ;;  %v1047_v48 = vpop.f32.mrb[5].mxu0 }
 0x104   : > { %v678_v49 = vpop.f32.mrb[6].mxu0 }
 0x105   : > { %v679_v50 = vadd.f32 %v1037_v45, %v678_v49  ;;  %v1048_v51 = vpop.f32.mrb[7].mxu0 }
 0x111   : > { %v814_v52 = vpop.f32.mrb[0].mxu1 }
 0x112   : > { %v815_v54 = vadd.f32 %v814_v52, %v676_v47  ;;  %v816_v55 = vpop.f32.mrb[1].mxu1 }
 0x113   : > { %v817_v57 = vpop.f32.mrb[2].mxu1 }
 0x114   : > { %v828_v58 = vadd.f32 %v1012_v53, %v815_v54  ;;  %v818_v59 = vadd.f32 %v817_v57, %v679_v50  ;;  %v819_v60 = vpop.f32.mrb[3].mxu1 }
 0x116   : > { %v832_v62 = vadd.f32 %v830_v56, %v828_v58  ;;  %v829_v63 = vadd.f32 %v1012_v53, %v818_v59 }
 0x118   : > { %1100 = vtanh.f32 %v832_v62  ;;  %v833_v0 = vadd.f32 %v831_v61, %v829_v63 }
 0x11a   : > { %1102 = vtanh.f32 %v833_v0 }
 0x122   : > { %v1101_v8 = vpop.eup %1100 }
 0x123   : > { %v844_v10 = vmul.f32 %v1101_v8, %v834_v1 }
 0x124   : > { %v1103_v11 = vpop.eup %1102 }
 0x125   : > { %v846_v12 = vadd.f32 %v844_v10, %v840_v7  ;;  %v845_v13 = vmul.f32 %v1103_v11, %v835_v2 }
 0x127   : > { %849 = vst.msk [vmem:[%s401_s12] sm:$0xff] %vm848_vm4, %v846_v12  ;;  %v847_v14 = vadd.f32 %v845_v13, %v841_v9 }
 0x129   : > { %850 = vst.msk [vmem:[%s401_s12 + $0x8] sm:$0xff] %vm848_vm4, %v847_v14 }
 0x12a PF: > { %s18_s27 = sadd.s32 1, %s1110_s27  }
 0x12b   : > { %p15_p4 = scmp.ge.s32.totalorder %s18_s27, 4  }
 0x12d   :  { %17 = sbr.rel (!%p15_p4) target bundleno = 1 (0x1), region = 94 }

// kernel: evflownet_forward.29
= control target key start
LH: loop header
LB: loop body
LE: loop exit
PB: predicated region body
PF: predicated region fallthrough
CT: control target
= control target key end

     0   :  { %s728_s21 = smov 0   ;;  %s811_s0 = inlined_call_operand.vmem [shape: bf16[32,216], index: 0, kind: input, shape index: {}]   ;;  %s812_s1 = inlined_call_operand.vmem [shape: bf16[216,32], index: 1, kind: input, shape index: {}]   ;;  %s813_s2 = inlined_call_operand.vmem [shape: f32[1,32], index: 2, kind: input, shape index: {}]   ;;  %s814_s3 = inlined_call_operand.vmem [shape: bf16[32,2], index: 3, kind: input, shape index: {}]   ;;  %s815_s4 = inlined_call_operand.vmem [shape: f32[1,2], index: 4, kind: input, shape index: {}]   ;;  %s816_s5 = inlined_call_operand.vmem [shape: f32[32,2], index: 5, kind: input, shape index: {}]   ;;  %s817_s6 = inlined_call_operand.vmem [shape: f32[32,2], index: 6, kind: output, shape index: {}]  }
   0x1 LB: > { %s604_s22 = sadd.s32 4294967295, %s688_s21   ;;  %p608_p0 = scmp.ge.s32.totalorder %s688_s21, 1  ;;  %s688_s21 = sphi %s728_s21, %s16_s21  }
   0x2   : > { %p225_p1 = scmp.lt.s32.totalorder %s688_s21, 3 }
   0x4   : > { %p226_p2 = pnand %p608_p0, %p225_p1 }
   0x5   : > { %v663_v0 = vld [vmem:[%s812_s1] sm:$0xff] (!%p226_p2)   ;;  %v690_v1 = vmov (!%p226_p2), 0   ;;  %v664_v2 = vld [vmem:[%s812_s1 + $0x8] sm:$0xff] (!%p226_p2)   ;;  %s609_s27 = sshll.u32 (!%p226_p2), %s604_s22, 1  ;;  %v665_v3 = vld [vmem:[%s812_s1 + $0x10] sm:$0xff] (!%p226_p2)   ;;  %vm407_vm0 = vcmask (!%p226_p2), 719872  }
   0x6   : > { %229 = sbr.rel (%p226_p2) target bundleno = 499 (0x1f3), region = 44  ;;  %415 = vmatprep.subr.bf16.mxu0 (!%p226_p2), %v690_v1  ;;  %p262_p3 = scmp.lt.s32.totalorder (!%p226_p2), %s609_s27, 3  ;;  %v666_v4 = vld [vmem:[%s812_s1 + $0x18] sm:$0xff] (!%p226_p2)   ;;  %v667_v5 = vld [vmem:[%s812_s1 + $0x20] sm:$0xff] (!%p226_p2)   ;;  %v668_v7 = vld [vmem:[%s812_s1 + $0x28] sm:$0xff] (!%p226_p2)   ;;  %vm411_vm1 = vcmask (!%p226_p2), 1043456  }
   0x7   : > { %416 = vmatpush1.bf16.msra.mxu0 (!%p226_p2), %v663_v0  ;;  %v669_v8 = vld [vmem:[%s812_s1 + $0x30] sm:$0xff] (!%p226_p2)   ;;  %v670_v9 = vld [vmem:[%s812_s1 + $0x38] sm:$0xff] (!%p226_p2)   ;;  %v671_v10 = vld [vmem:[%s812_s1 + $0x40] sm:$0xff] (!%p226_p2)   ;;  %v691_v19 = vmov (!%p226_p2), 0.0   ;;  %vm692_vm2 = vmmov (!%p226_p2), 0   ;;  %vm486_vm3 = vcmask (!%p226_p2), 261120  }
   0x8   : > { %417 = vmatprep.subr.bf16.mxu0 (!%p226_p2), %v690_v1  ;;  %v672_v11 = vld [vmem:[%s812_s1 + $0x48] sm:$0xff] (!%p226_p2)   ;;  %v673_v12 = vld [vmem:[%s812_s1 + $0x50] sm:$0xff] (!%p226_p2)   ;;  %v674_v13 = vld [vmem:[%s812_s1 + $0x58] sm:$0xff] (!%p226_p2)   ;;  %644 = vmatprep.subr.bf16.mxu1 (!%p226_p2), %v691_v19  ;;  %vm533_vm4 = vcmask (!%p226_p2), 15360  }
   0x9   : > { %v675_v14 = vld [vmem:[%s812_s1 + $0x60] sm:$0xff] (!%p226_p2)   ;;  %v676_v15 = vld [vmem:[%s812_s1 + $0x68] ss:$0 sps:$4 sm:$0xff] (!%p226_p2)   ;;  %648 = vmatprep.mubr.msk.bf16.mxu1 (!%p226_p2), %vm692_vm2, %v691_v19 }
   0xa   : > { %v413_v16 = vsel (!%p226_p2), %vm411_vm1, %v676_v15, 0  ;;  %v680_v18 = vld [vmem:[%s814_s3] sm:$0xff] (!%p226_p2)   ;;  %v681_v20 = vld [vmem:[%s814_s3 + $0x8] sm:$0xff] (!%p226_p2)  }
   0xb   : > { %418 = vmatpush1.bf16.msra.mxu0 (!%p226_p2), %v664_v2  ;;  %645 = vmatpush3.bf16.msra.mxu1 (!%p226_p2), %v680_v18  ;;  %v616_v21 = vld [vmem:[%s813_s2] ss:$0 sm:$0xff] (!%p226_p2) }
   0xc   : > { %419 = vmatprep.subr.bf16.mxu0 (!%p226_p2), %v690_v1  ;;  %646 = vmatprep.subr.bf16.mxu1 (!%p226_p2), %v691_v19  ;;  %v634_v32 = vld [vmem:[%s815_s4] ss:$0 sm:$0xff] (!%p226_p2) }
   0xd   : > { %s819_s27 = smov (!%p262_p3, %s609_s27), 3 }
   0xe   : > { %s745_s30 = sshll.u32 %s819_s27, 3 }
   0xf   : > { %420 = vmatpush1.bf16.msra.mxu0 %v665_v3  ;;  %s754_s11 = scalar_lea.vmem %s811_s0, %s745_s30  ;;  %647 = vmatpush3.bf16.msra.mxu1 %v681_v20  ;;  %s272_s18 = scalar_lea.vmem %s816_s5, %s745_s30 }
  0x10   : > { %421 = vmatprep.subr.bf16.mxu0 %v690_v1  ;;  %v679_v6 = vld [vmem:[%s754_s11 + $0x4] ss:$8 sps:$4 sm:$0xff]   ;;  %v677_v17 = vld [vmem:[%s754_s11] ss:$8 sps:$4 sm:$0xff]   ;;  %s278_s24 = scalar_lea.vmem %s817_s6, %s745_s30 }
  0x11   : > { %633 = vmatprep.mubr.msk.bf16.mxu0 %vm407_vm0, %v679_v6  ;;  %v459_v31 = vld [vmem:[%s272_s18] sm:$0xff]  ;;  %v460_v33 = vld [vmem:[%s272_s18 + $0x8] sm:$0xff] }
  0x12   : > { %v468_v34 = vadd.f32 %v634_v32, %v459_v31  ;;  %v469_v35 = vadd.f32 %v634_v32, %v460_v33 }
  0x13   : > { %422 = vmatpush1.bf16.msra.mxu0 %v666_v4 }
  0x14   : > { %423 = vmatprep.subr.bf16.mxu0 %v690_v1 }
  0x17   : > { %424 = vmatpush1.bf16.msra.mxu0 %v667_v5 }
  0x18   : > { %425 = vmatprep.subr.bf16.mxu0 %v690_v1 }
  0x1b   : > { %426 = vmatpush1.bf16.msra.mxu0 %v668_v7 }
  0x1c   : > { %427 = vmatprep.subr.bf16.mxu0 %v690_v1 }
  0x1f   : > { %428 = vmatpush1.bf16.msra.mxu0 %v669_v8 }
  0x20   : > { %429 = vmatprep.subr.bf16.mxu0 %v690_v1 }
  0x23   : > { %430 = vmatpush1.bf16.msra.mxu0 %v670_v9 }
  0x24   : > { %431 = vmatprep.subr.bf16.mxu0 %v690_v1 }
  0x27   : > { %432 = vmatpush1.bf16.msra.mxu0 %v671_v10 }
  0x28   : > { %433 = vmatprep.subr.bf16.mxu0 %v690_v1 }
  0x2b   : > { %434 = vmatpush1.bf16.msra.mxu0 %v672_v11 }
  0x2c   : > { %435 = vmatprep.subr.bf16.mxu0 %v690_v1 }
  0x2f   : > { %436 = vmatpush1.bf16.msra.mxu0 %v673_v12 }
  0x30   : > { %437 = vmatprep.subr.bf16.mxu0 %v690_v1 }
  0x33   : > { %438 = vmatpush1.bf16.msra.mxu0 %v674_v13 }
  0x34   : > { %439 = vmatprep.subr.bf16.mxu0 %v690_v1 }
  0x37   : > { %440 = vmatpush1.bf16.msra.mxu0 %v675_v14 }
  0x38   : > { %441 = vmatprep.subr.bf16.mxu0 %v690_v1 }
  0x3b   : > { %442 = vmatpush1.bf16.msra.mxu0 %v413_v16 }
  0x3e   : > { %448 = vmatmul.mubr.bf16.vlgmr.msra.gmra.mrb[0].mxu0 %v677_v17 }
 0x111   : > { %v449_v22 = vpop.f32.mrb[0].mxu0 }
 0x112   : > { %v450_v23 = vadd.f32 %v616_v21, %v449_v22  ;;  %v451_v24 = vpop.f32.mrb[1].mxu0 }
 0x113   : > { %v452_v25 = vpop.f32.mrb[2].mxu0 }
 0x114   : > { %v453_v26 = vadd.f32 %v616_v21, %v452_v25  ;;  %v454_v27 = vpop.f32.mrb[3].mxu0  ;;  %v456_v28 = vmax.f32 %v450_v23, 0.0 }
 0x116   : > { %v457_v29 = vmax.f32 %v453_v26, 0.0 }
 0x118   : > { %v458_v30 = vpack.c.bf16 %v457_v29, %v456_v28 }
 0x11a   : > { %649 = vmatmul.mubr.msk.bf16.vlgmr.msra.gmra.mrb[0].mxu1 %vm486_vm3, %v458_v30 }
 0x1ed   : > { %v524_v36 = vpop.f32.mrb[0].mxu1 }
 0x1ee   : > { %v531_v37 = vadd.f32 %v524_v36, %v468_v34  ;;  %v650_v38 = vpop.f32.mrb[1].mxu1 }
 0x1ef   : > { %v527_v39 = vpop.f32.mrb[2].mxu1 }
 0x1f0   : > { %534 = vst.msk [vmem:[%s278_s24] sm:$0xff] %vm533_vm4, %v531_v37  ;;  %v532_v40 = vadd.f32 %v527_v39, %v469_v35  ;;  %v651_v41 = vpop.f32.mrb[3].mxu1 }
 0x1f2   : > { %535 = vst.msk [vmem:[%s278_s24 + $0x8] sm:$0xff] %vm533_vm4, %v532_v40 }
 0x1f3 PF: > { %s16_s21 = sadd.s32 1, %s688_s21  }
 0x1f4   : > { %p13_p4 = scmp.ge.s32.totalorder %s16_s21, 4  }
 0x1f6   :  { %15 = sbr.rel (!%p13_p4) target bundleno = 1 (0x1), region = 77 }

</bundles_post_ra>
